<compile_context>
chip_gen: v5e
topology: v5e:2x2
jax: 0.10.0
libtpu: 0.0.40
codegen_flags: <defaults>
</compile_context>

<pallas_src>
import jax
import jax.numpy as jnp
from jax.experimental import pallas as pl
from jax.experimental.pallas import tpu as pltpu

INPUT_CHANNELS = 1
NUM_FILTERS = 64          # F
KERNEL_SIZE = 3           # K
FC_UNITS = 128
SEQ_LEN = 60
L_OUT = SEQ_LEN - KERNEL_SIZE + 1     # 58
L_PAD = 64                             # lane-dense padded L_out
FLAT_PAD = NUM_FILTERS * L_PAD         # 4096 = 32 * 128 lanes


def _round_up(x, m):
    return (x + m - 1) // m * m


def fused_cnn_kernel(x_ref, wc_ref, bc_ref, wfc_ref, bfc_ref, wout_ref, bout_ref, o_ref):
    # x_ref:   (B_TILE, 64)    bf16   input rows (seq padded 60->64)
    # wc_ref:  (64, 4096)      bf16   conv expressed as dense matmul weights
    # bc_ref:  (1, 4096)       f32    conv bias broadcast over (filter, l) lanes
    # wfc_ref: (4096, 128)     bf16   fc weight (rows zero-padded to match layout)
    # bfc_ref: (1, 128)        f32
    # wout_ref:(1, 128)        f32    output head as a row vector
    # bout_ref:(1, 1)          f32
    # o_ref:   (B_TILE, 1)     f32

    # Conv1d + bias + ReLU, directly in lane-dense flattened layout.
    h = jnp.dot(x_ref[...], wc_ref[...], preferred_element_type=jnp.float32)
    h = jnp.maximum(h + bc_ref[...], 0.0)                       # (B_TILE, 4096) f32

    # fc layer on the MXU (bf16 inputs, f32 accumulation).
    z = jnp.dot(h.astype(jnp.bfloat16), wfc_ref[...],
                preferred_element_type=jnp.float32)
    z = z + bfc_ref[...]                                        # (B_TILE, 128)

    # Output head (N=1): VPU multiply + lane reduction instead of an MXU matmul.
    y = jnp.sum(z * wout_ref[...], axis=-1, keepdims=True) + bout_ref[...]
    o_ref[...] = y


def _prepare_operands(params):
    """Repack PyTorch-shaped params into the lane-dense kernel layout (cheap, once)."""
    wconv, bconv, wfc, bfc, wout, bout = params
    w = wconv[:, 0, :].astype(jnp.float32)                      # (64, 3)

    # Dense conv-as-matmul weights: Wm[j, f*64 + l] = w[f, j - l] for 0 <= j-l < K, l < L_OUT.
    j = jnp.arange(L_PAD)[:, None, None]                        # input position (padded)
    f = jnp.arange(NUM_FILTERS)[None, :, None]
    l = jnp.arange(L_PAD)[None, None, :]
    k = j - l
    valid = (k >= 0) & (k < KERNEL_SIZE) & (l < L_OUT) & (j < SEQ_LEN)
    kc = jnp.clip(k, 0, KERNEL_SIZE - 1)
    wmat = jnp.where(valid, w[f, kc], 0.0)                      # (64, 64, 64) -> (j, f, l)
    wconv_mat = wmat.reshape(L_PAD, FLAT_PAD).astype(jnp.bfloat16)

    # Conv bias row, zero in the padded l columns.
    lane_valid = (jnp.arange(L_PAD) < L_OUT).astype(jnp.float32)
    bconv_row = (bconv.astype(jnp.float32)[:, None] * lane_valid[None, :]).reshape(1, FLAT_PAD)

    # fc weight: (128, 3712) -> rows indexed by f*58+l -> pad l to 64 -> (4096, 128).
    wfc_t = wfc.astype(jnp.float32).T.reshape(NUM_FILTERS, L_OUT, FC_UNITS)
    wfc_pad = jnp.pad(wfc_t, ((0, 0), (0, L_PAD - L_OUT), (0, 0)))
    wfc_pad = wfc_pad.reshape(FLAT_PAD, FC_UNITS).astype(jnp.bfloat16)

    bfc_row = bfc.astype(jnp.float32).reshape(1, FC_UNITS)
    wout_row = wout.astype(jnp.float32).reshape(1, FC_UNITS)
    bout_v = bout.astype(jnp.float32).reshape(1, 1)
    return wconv_mat, bconv_row, wfc_pad, bfc_row, wout_row, bout_v


def cnn_forward(x, params):
    """x: (B, 1, 60) float32 -> (B, 1) float32."""
    B = x.shape[0]
    wconv_mat, bconv_row, wfc_pad, bfc_row, wout_row, bout_v = _prepare_operands(params)

    # Batch tiling: >= 8 rows (sublane-dense), up to 256 rows per grid step.
    b_tile = min(256, _round_up(B, 8))
    b_pad = _round_up(B, b_tile)

    # Pad input: rows B -> b_pad, seq 60 -> 64 (zeros), cast to bf16 for the MXU.
    xp = jnp.zeros((b_pad, L_PAD), jnp.float32)
    xp = xp.at[:B, :SEQ_LEN].set(x[:, 0, :]).astype(jnp.bfloat16)

    flops = 2 * b_pad * (L_PAD * FLAT_PAD + FLAT_PAD * FC_UNITS + FC_UNITS)
    bytes_accessed = (xp.size * 2 + wconv_mat.size * 2 + wfc_pad.size * 2
                      + bconv_row.size * 4 + bfc_row.size * 4 + wout_row.size * 4
                      + 4 + b_pad * 4)

    y_pad = pl.pallas_call(
        fused_cnn_kernel,
        out_shape=jax.ShapeDtypeStruct((b_pad, 1), jnp.float32),
        grid=(b_pad // b_tile,),
        in_specs=[
            pl.BlockSpec((b_tile, L_PAD), lambda i: (i, 0)),
            pl.BlockSpec((L_PAD, FLAT_PAD), lambda i: (0, 0)),
            pl.BlockSpec((1, FLAT_PAD), lambda i: (0, 0)),
            pl.BlockSpec((FLAT_PAD, FC_UNITS), lambda i: (0, 0)),
            pl.BlockSpec((1, FC_UNITS), lambda i: (0, 0)),
            pl.BlockSpec((1, FC_UNITS), lambda i: (0, 0)),
            pl.BlockSpec((1, 1), lambda i: (0, 0)),
        ],
        out_specs=pl.BlockSpec((b_tile, 1), lambda i: (i, 0)),
        compiler_params=pltpu.CompilerParams(dimension_semantics=("parallel",)),
        cost_estimate=pl.CostEstimate(flops=flops, transcendentals=0,
                                      bytes_accessed=bytes_accessed),
    )(xp, wconv_mat, bconv_row, wfc_pad, bfc_row, wout_row, bout_v)

    return y_pad[:B]


def ref_forward(x, params):
    """Pure-JAX (f32) reference mirroring the PyTorch forward exactly."""
    wconv, bconv, wfc, bfc, wout, bout = params
    B = x.shape[0]
    w = wconv[:, 0, :]                                            # (64, 3)
    xv = x[:, 0, :]                                               # (B, 60)
    cols = jnp.stack([xv[:, k:k + L_OUT] for k in range(KERNEL_SIZE)], axis=1)  # (B,3,58)
    h = jnp.einsum("fk,bkl->bfl", w, cols) + bconv[None, :, None]
    h = jnp.maximum(h, 0.0)
    hf = h.reshape(B, NUM_FILTERS * L_OUT)
    z = hf @ wfc.T + bfc
    return z @ wout.T + bout


def init_params(key):
    """Deterministic synthetic params in PyTorch-native shapes/ranges."""
    k1, k2, k3, k4, k5, k6 = jax.random.split(key, 6)
    flat = NUM_FILTERS * L_OUT
    lim_c = 1.0 / (INPUT_CHANNELS * KERNEL_SIZE) ** 0.5
    wconv = jax.random.uniform(k1, (NUM_FILTERS, INPUT_CHANNELS, KERNEL_SIZE),
                               jnp.float32, -lim_c, lim_c)
    bconv = jax.random.uniform(k2, (NUM_FILTERS,), jnp.float32, -lim_c, lim_c)
    lim_f = 1.0 / flat ** 0.5
    wfc = jax.random.uniform(k3, (FC_UNITS, flat), jnp.float32, -lim_f, lim_f)
    bfc = jax.random.uniform(k4, (FC_UNITS,), jnp.float32, -lim_f, lim_f)
    lim_o = 1.0 / FC_UNITS ** 0.5
    wout = jax.random.uniform(k5, (1, FC_UNITS), jnp.float32, -lim_o, lim_o)
    bout = jax.random.uniform(k6, (1,), jnp.float32, -lim_o, lim_o)
    return (wconv, bconv, wfc, bfc, wout, bout)


if __name__ == "__main__":
    key = jax.random.PRNGKey(0)
    pkey, xkey = jax.random.split(key)
    params = init_params(pkey)

    # The model's fc layer hard-codes seq_len=60 -> input (batch=2, channels=1, 60).
    x = jax.random.normal(xkey, (2, INPUT_CHANNELS, SEQ_LEN), dtype=jnp.float32)

    y = jax.block_until_ready(jax.jit(cnn_forward)(x, params))
    y_ref = ref_forward(x, params)

    assert y.shape == (2, 1), y.shape
    # bf16 MXU inputs with f32 accumulation -> tolerance relaxed vs pure-f32 reference.
    assert jnp.allclose(y, y_ref, atol=2e-2, rtol=2e-2), (y, y_ref)
    print("KERNEL_OK")
</pallas_src>

<mosaic_0001>
module attributes {stable_mosaic.version = 11 : i64} {
  func.func @fused_cnn_kernel(%arg0: i32, %arg1: memref<8x64xbf16, #tpu.memory_space<vmem>>, %arg2: memref<64x4096xbf16, #tpu.memory_space<vmem>>, %arg3: memref<1x4096xf32, #tpu.memory_space<vmem>>, %arg4: memref<4096x128xbf16, #tpu.memory_space<vmem>>, %arg5: memref<1x128xf32, #tpu.memory_space<vmem>>, %arg6: memref<1x128xf32, #tpu.memory_space<vmem>>, %arg7: memref<1x1xf32, #tpu.memory_space<vmem>>, %arg8: memref<8x1xf32, #tpu.memory_space<vmem>>) attributes {dimension_semantics = [#tpu.dimension_semantics<parallel>], iteration_bounds = array<i64: 1>, scalar_prefetch = 0 : i64, scratch_operands = 0 : i64, tpu.core_type = #tpu.core_type<tc>, window_params = [{transform_indices = @transform_0, window_bounds = array<i64: 8, 64>}, {pipeline_mode = #tpu.pipeline_mode<synchronous>, transform_indices = @transform_1, window_bounds = array<i64: 64, 4096>}, {pipeline_mode = #tpu.pipeline_mode<synchronous>, transform_indices = @transform_2, window_bounds = array<i64: 1, 4096>}, {pipeline_mode = #tpu.pipeline_mode<synchronous>, transform_indices = @transform_3, window_bounds = array<i64: 4096, 128>}, {pipeline_mode = #tpu.pipeline_mode<synchronous>, transform_indices = @transform_4, window_bounds = array<i64: 1, 128>}, {pipeline_mode = #tpu.pipeline_mode<synchronous>, transform_indices = @transform_5, window_bounds = array<i64: 1, 128>}, {pipeline_mode = #tpu.pipeline_mode<synchronous>, transform_indices = @transform_6, window_bounds = array<i64: 1, 1>}, {transform_indices = @transform_7, window_bounds = array<i64: 8, 1>}]} {
    %c0 = arith.constant 0 : index
    %c0_0 = arith.constant 0 : index
    %0 = vector.load %arg1[%c0, %c0_0] : memref<8x64xbf16, #tpu.memory_space<vmem>>, vector<8x64xbf16>
    %c0_1 = arith.constant 0 : index
    %c0_2 = arith.constant 0 : index
    %1 = vector.load %arg2[%c0_1, %c0_2] : memref<64x4096xbf16, #tpu.memory_space<vmem>>, vector<64x4096xbf16>
    %cst = arith.constant dense<0.000000e+00> : vector<8x4096xf32>
    %2 = tpu.matmul %0, %1, %cst {dimension_numbers = #tpu.dot_dimension_numbers<[1], [0], [0], [1], [0, 0, 1, 1], [], []>} : vector<8x64xbf16>, vector<64x4096xbf16>, vector<8x4096xf32> -> vector<8x4096xf32>
    %c0_3 = arith.constant 0 : index
    %c0_4 = arith.constant 0 : index
    %3 = vector.load %arg3[%c0_3, %c0_4] : memref<1x4096xf32, #tpu.memory_space<vmem>>, vector<1x4096xf32>
    %4 = vector.broadcast %3 : vector<1x4096xf32> to vector<8x4096xf32>
    %5 = arith.addf %2, %4 : vector<8x4096xf32>
    %cst_5 = arith.constant 0.000000e+00 : f32
    %6 = vector.broadcast %cst_5 : f32 to vector<8x4096xf32>
    %7 = arith.maximumf %5, %6 : vector<8x4096xf32>
    %8 = arith.truncf %7 : vector<8x4096xf32> to vector<8x4096xbf16>
    %c0_6 = arith.constant 0 : index
    %c0_7 = arith.constant 0 : index
    %9 = vector.load %arg4[%c0_6, %c0_7] : memref<4096x128xbf16, #tpu.memory_space<vmem>>, vector<4096x128xbf16>
    %cst_8 = arith.constant dense<0.000000e+00> : vector<8x128xf32>
    %10 = tpu.matmul %8, %9, %cst_8 {dimension_numbers = #tpu.dot_dimension_numbers<[1], [0], [0], [1], [0, 0, 1, 1], [], []>} : vector<8x4096xbf16>, vector<4096x128xbf16>, vector<8x128xf32> -> vector<8x128xf32>
    %c0_9 = arith.constant 0 : index
    %c0_10 = arith.constant 0 : index
    %11 = vector.load %arg5[%c0_9, %c0_10] : memref<1x128xf32, #tpu.memory_space<vmem>>, vector<1x128xf32>
    %12 = vector.broadcast %11 : vector<1x128xf32> to vector<8x128xf32>
    %13 = arith.addf %10, %12 : vector<8x128xf32>
    %c0_11 = arith.constant 0 : index
    %c0_12 = arith.constant 0 : index
    %14 = vector.load %arg6[%c0_11, %c0_12] : memref<1x128xf32, #tpu.memory_space<vmem>>, vector<1x128xf32>
    %15 = vector.broadcast %14 : vector<1x128xf32> to vector<8x128xf32>
    %16 = arith.mulf %13, %15 : vector<8x128xf32>
    %cst_13 = arith.constant dense<0.000000e+00> : vector<8xf32>
    %17 = vector.multi_reduction <add>, %16, %cst_13 [1] : vector<8x128xf32> to vector<8xf32>
    %18 = vector.shape_cast %17 : vector<8xf32> to vector<8x1xf32>
    %c0_14 = arith.constant 0 : index
    %c0_15 = arith.constant 0 : index
    %19 = vector.load %arg7[%c0_14, %c0_15] : memref<1x1xf32, #tpu.memory_space<vmem>>, vector<1x1xf32>
    %20 = vector.broadcast %19 : vector<1x1xf32> to vector<8x1xf32>
    %21 = arith.addf %18, %20 : vector<8x1xf32>
    %c0_16 = arith.constant 0 : index
    %c0_17 = arith.constant 0 : index
    %22 = vector.load %arg8[%c0_16, %c0_17] : memref<8x1xf32, #tpu.memory_space<vmem>>, vector<8x1xf32>
    tpu.vector_store %arg8[%c0_16, %c0_17], %21 {strides = array<i32>} : memref<8x1xf32, #tpu.memory_space<vmem>>, vector<8x1xf32>,
    return
  }
  func.func @transform_0(%arg0: i32) -> (i32, i32) {
    %c0_i32 = arith.constant 0 : i32
    %c0_i32_0 = arith.constant 0 : i32
    return %arg0, %c0_i32 : i32, i32
  }
  func.func @transform_1(%arg0: i32) -> (i32, i32) {
    %c0_i32 = arith.constant 0 : i32
    %c0_i32_0 = arith.constant 0 : i32
    %c0_i32_1 = arith.constant 0 : i32
    return %c0_i32, %c0_i32_0 : i32, i32
  }
  func.func @transform_2(%arg0: i32) -> (i32, i32) {
    %c0_i32 = arith.constant 0 : i32
    %c0_i32_0 = arith.constant 0 : i32
    %c0_i32_1 = arith.constant 0 : i32
    return %c0_i32, %c0_i32_0 : i32, i32
  }
  func.func @transform_3(%arg0: i32) -> (i32, i32) {
    %c0_i32 = arith.constant 0 : i32
    %c0_i32_0 = arith.constant 0 : i32
    %c0_i32_1 = arith.constant 0 : i32
    return %c0_i32, %c0_i32_0 : i32, i32
  }
  func.func @transform_4(%arg0: i32) -> (i32, i32) {
    %c0_i32 = arith.constant 0 : i32
    %c0_i32_0 = arith.constant 0 : i32
    %c0_i32_1 = arith.constant 0 : i32
    return %c0_i32, %c0_i32_0 : i32, i32
  }
  func.func @transform_5(%arg0: i32) -> (i32, i32) {
    %c0_i32 = arith.constant 0 : i32
    %c0_i32_0 = arith.constant 0 : i32
    %c0_i32_1 = arith.constant 0 : i32
    return %c0_i32, %c0_i32_0 : i32, i32
  }
  func.func @transform_6(%arg0: i32) -> (i32, i32) {
    %c0_i32 = arith.constant 0 : i32
    %c0_i32_0 = arith.constant 0 : i32
    %c0_i32_1 = arith.constant 0 : i32
    return %c0_i32, %c0_i32_0 : i32, i32
  }
  func.func @transform_7(%arg0: i32) -> (i32, i32) {
    %c0_i32 = arith.constant 0 : i32
    %c0_i32_0 = arith.constant 0 : i32
    return %arg0, %c0_i32 : i32, i32
  }
}

</mosaic_0001>

<bundles_post_ra>
// kernel: cnn_forward.1
= control target key start
LH: loop header
LB: loop body
LE: loop exit
PB: predicated region body
PF: predicated region fallthrough
CT: control target
= control target key end

     0   :  { %vm870_vm0 = vcmask 523264   ;;  %vm3834_vm1 = vcmask 7168   ;;  %s7582_s1 = inlined_call_operand.vmem [shape: bf16[64,4096], index: 1, kind: input, shape index: {}]   ;;  %s7583_s0 = inlined_call_operand.vmem [shape: bf16[8,64], index: 0, kind: input, shape index: {}]   ;;  %s7584_s3 = inlined_call_operand.vmem [shape: bf16[4096,128], index: 3, kind: input, shape index: {}]   ;;  %s7585_s2 = inlined_call_operand.vmem [shape: f32[1,4096], index: 2, kind: input, shape index: {}]   ;;  %s7586_s4 = inlined_call_operand.vmem [shape: f32[1,128], index: 4, kind: input, shape index: {}]   ;;  %s7587_s5 = inlined_call_operand.vmem [shape: f32[1,128], index: 5, kind: input, shape index: {}]   ;;  %s7588_s6 = inlined_call_operand.<no memory space> [shape: f32[1,1], index: 6, kind: input, shape index: {}]   ;;  %s7589_s7 = inlined_call_operand.vmem [shape: f32[8,1], index: 7, kind: output, shape index: {}]  }
   0x1   :  { %v4226_v0 = vld [vmem:[%s7582_s1 + $0x300] sm:$0xf]  ;;  %v5504_v2 = vld [vmem:[%s7582_s1 + $0x304] sm:$0xf]  ;;  %v4234_v5 = vld [vmem:[%s7582_s1 + $0x308] sm:$0xf] }
   0x2   :  { %v5520_v1 = vld [vmem:[%s7582_s1 + $0x37c] sm:$0xf0]  ;;  %v4228_v4 = vld [vmem:[%s7582_s1 + $0x380] sm:$0xf0]  ;;  %v5521_v6 = vld [vmem:[%s7582_s1 + $0x384] sm:$0xf0] }
   0x3   :  { %v4227_v3 = vor.u32 %v5520_v1, %v4226_v0  ;;  %v4231_v7 = vor.u32 %v5504_v2, %v4228_v4  ;;  %v4235_v8 = vor.u32 %v5521_v6, %v4234_v5  ;;  %v5505_v9 = vld [vmem:[%s7582_s1 + $0x30c] sm:$0xf]  ;;  %v4098_v11 = vld [vmem:[%s7582_s1 + $0x200] sm:$0xf]  ;;  %v5472_v14 = vld [vmem:[%s7582_s1 + $0x204] sm:$0xf] }
   0x4   :  { %v4236_v10 = vld [vmem:[%s7582_s1 + $0x388] sm:$0xf0]  ;;  %v5488_v13 = vld [vmem:[%s7582_s1 + $0x27c] sm:$0xf0]  ;;  %v4100_v15 = vld [vmem:[%s7582_s1 + $0x280] sm:$0xf0] }
   0x5   :  { %878 = vmatpush.bf16.msra.mxu0 %v4227_v3  ;;  %v4239_v12 = vor.u32 %v5505_v9, %v4236_v10  ;;  %891 = vmatpush.bf16.msra.mxu1 %v4231_v7  ;;  %v4099_v16 = vor.u32 %v5488_v13, %v4098_v11  ;;  %v4103_v17 = vor.u32 %v5472_v14, %v4100_v15  ;;  %v4106_v18 = vld [vmem:[%s7582_s1 + $0x208] sm:$0xf]  ;;  %v5473_v20 = vld [vmem:[%s7582_s1 + $0x20c] sm:$0xf]  ;;  %v3970_v23 = vld [vmem:[%s7582_s1 + $0x100] sm:$0xf] }
   0x6   :  { %904 = vmatpush.bf16.msra.mxu2 %v4235_v8  ;;  %v5489_v19 = vld [vmem:[%s7582_s1 + $0x284] sm:$0xf0]  ;;  %v4108_v22 = vld [vmem:[%s7582_s1 + $0x288] sm:$0xf0]  ;;  %v5456_v24 = vld [vmem:[%s7582_s1 + $0x17c] sm:$0xf0] }
   0x7   :  { %917 = vmatpush.bf16.msra.mxu3 %v4239_v12  ;;  %v4107_v21 = vor.u32 %v5489_v19, %v4106_v18  ;;  %v4111_v25 = vor.u32 %v5473_v20, %v4108_v22  ;;  %v5440_v26 = vld [vmem:[%s7582_s1 + $0x104] sm:$0xf]  ;;  %v3978_v28 = vld [vmem:[%s7582_s1 + $0x108] sm:$0xf]  ;;  %v3971_v29 = vor.u32 %v5456_v24, %v3970_v23  ;;  %v5441_v31 = vld [vmem:[%s7582_s1 + $0x10c] sm:$0xf] }
   0x8   :  { %v3972_v27 = vld [vmem:[%s7582_s1 + $0x180] sm:$0xf0]  ;;  %v5457_v30 = vld [vmem:[%s7582_s1 + $0x184] sm:$0xf0]  ;;  %v3980_v32 = vld [vmem:[%s7582_s1 + $0x188] sm:$0xf0] }
   0x9   :  { %879 = vmatpush.bf16.msra.mxu0 %v4099_v16  ;;  %892 = vmatpush.bf16.msra.mxu1 %v4103_v17  ;;  %v3975_v33 = vor.u32 %v5440_v26, %v3972_v27  ;;  %v3979_v34 = vor.u32 %v5457_v30, %v3978_v28  ;;  %v3842_v35 = vld [vmem:[%s7582_s1] sm:$0xf]  ;;  %v5408_v37 = vld [vmem:[%s7582_s1 + $0x4] sm:$0xf]  ;;  %v3983_v38 = vor.u32 %v5441_v31, %v3980_v32  ;;  %v3850_v40 = vld [vmem:[%s7582_s1 + $0x8] sm:$0xf] }
   0xa   :  { %905 = vmatpush.bf16.msra.mxu2 %v4107_v21  ;;  %v5424_v36 = vld [vmem:[%s7582_s1 + $0x7c] sm:$0xf0]  ;;  %v3844_v39 = vld [vmem:[%s7582_s1 + $0x80] sm:$0xf0]  ;;  %v5425_v41 = vld [vmem:[%s7582_s1 + $0x84] sm:$0xf0] }
   0xb   :  { %918 = vmatpush.bf16.msra.mxu3 %v4111_v25  ;;  %v5409_v42 = vld [vmem:[%s7582_s1 + $0xc] sm:$0xf]  ;;  %v3843_v44 = vor.u32 %v5424_v36, %v3842_v35  ;;  %v4242_v45 = vld [vmem:[%s7582_s1 + $0x310] sm:$0xf]  ;;  %v5506_v47 = vld [vmem:[%s7582_s1 + $0x314] sm:$0xf]  ;;  %v3847_v48 = vor.u32 %v5408_v37, %v3844_v39  ;;  %v3851_v49 = vor.u32 %v5425_v41, %v3850_v40 }
   0xc   :  { %v3852_v43 = vld [vmem:[%s7582_s1 + $0x88] sm:$0xf0]  ;;  %v5522_v46 = vld [vmem:[%s7582_s1 + $0x38c] sm:$0xf0]  ;;  %v4244_v50 = vld [vmem:[%s7582_s1 + $0x390] sm:$0xf0] }
   0xd   :  { %880 = vmatpush.bf16.msra.mxu0 %v3971_v29  ;;  %893 = vmatpush.bf16.msra.mxu1 %v3975_v33  ;;  %v3855_v51 = vor.u32 %v5409_v42, %v3852_v43  ;;  %v4243_v52 = vor.u32 %v5522_v46, %v4242_v45  ;;  %v4250_v53 = vld [vmem:[%s7582_s1 + $0x318] sm:$0xf]  ;;  %v5507_v55 = vld [vmem:[%s7582_s1 + $0x31c] sm:$0xf]  ;;  %v4247_v56 = vor.u32 %v5506_v47, %v4244_v50  ;;  %v4114_v58 = vld [vmem:[%s7582_s1 + $0x210] sm:$0xf] }
   0xe   :  { %906 = vmatpush.bf16.msra.mxu2 %v3979_v34  ;;  %v5523_v54 = vld [vmem:[%s7582_s1 + $0x394] sm:$0xf0]  ;;  %v4252_v57 = vld [vmem:[%s7582_s1 + $0x398] sm:$0xf0]  ;;  %v5490_v59 = vld [vmem:[%s7582_s1 + $0x28c] sm:$0xf0] }
   0xf   :  { %919 = vmatpush.bf16.msra.mxu3 %v3983_v38  ;;  %v5965_v60 = vld [vmem:[%s7583_s0] sm:$0xf]  ;;  %v5474_v61 = vld [vmem:[%s7582_s1 + $0x214] sm:$0xf]  ;;  %v4251_v63 = vor.u32 %v5523_v54, %v4250_v53  ;;  %v4255_v0 = vor.u32 %v5507_v55, %v4252_v57  ;;  %v4115_v1 = vor.u32 %v5490_v59, %v4114_v58  ;;  %v4122_v2 = vld [vmem:[%s7582_s1 + $0x218] sm:$0xf] }
  0x10   :  { %v4116_v62 = vld [vmem:[%s7582_s1 + $0x290] sm:$0xf0]  ;;  %v5491_v3 = vld [vmem:[%s7582_s1 + $0x294] sm:$0xf0]  ;;  %v5475_v4 = vld [vmem:[%s7582_s1 + $0x21c] sm:$0xf] }
  0x11   :  { %881 = vmatpush.bf16.msra.mxu0 %v3843_v44  ;;  %894 = vmatpush.bf16.msra.mxu1 %v3847_v48  ;;  %v4119_v5 = vor.u32 %v5474_v61, %v4116_v62  ;;  %v4124_v6 = vld [vmem:[%s7582_s1 + $0x298] sm:$0xf0]  ;;  %v3986_v7 = vld [vmem:[%s7582_s1 + $0x110] sm:$0xf]  ;;  %v5442_v9 = vld [vmem:[%s7582_s1 + $0x114] sm:$0xf]  ;;  %v4123_v11 = vor.u32 %v5491_v3, %v4122_v2 }
  0x12   :  { %907 = vmatpush.bf16.msra.mxu2 %v3851_v49  ;;  %v5458_v8 = vld [vmem:[%s7582_s1 + $0x18c] sm:$0xf0]  ;;  %v3988_v10 = vld [vmem:[%s7582_s1 + $0x190] sm:$0xf0]  ;;  %v3994_v12 = vld [vmem:[%s7582_s1 + $0x118] sm:$0xf]  ;;  %v4127_v13 = vor.u32 %v5475_v4, %v4124_v6 }
  0x13   :  { %920 = vmatpush.bf16.msra.mxu3 %v3855_v51  ;;  %v3987_v14 = vor.u32 %v5458_v8, %v3986_v7  ;;  %v5459_v15 = vld [vmem:[%s7582_s1 + $0x194] sm:$0xf0]  ;;  %v5443_v16 = vld [vmem:[%s7582_s1 + $0x11c] sm:$0xf]  ;;  %v3991_v18 = vor.u32 %v5442_v9, %v3988_v10  ;;  %v3858_v19 = vld [vmem:[%s7582_s1 + $0x10] sm:$0xf] }
  0x14   :  { %4352 = vmatmul.msk.bf16.vlgmr.msra.gmra.mxu0 %vm870_vm0, %v5965_v60  ;;  %4353 = vmatmul.msk.bf16.vlgmr.msra.gmra.mxu1 %vm870_vm0, %v5965_v60  ;;  %v3996_v17 = vld [vmem:[%s7582_s1 + $0x198] sm:$0xf0]  ;;  %v5426_v20 = vld [vmem:[%s7582_s1 + $0x8c] sm:$0xf0]  ;;  %v5410_v21 = vld [vmem:[%s7582_s1 + $0x14] sm:$0xf]  ;;  %v3995_v25 = vor.u32 %v5459_v15, %v3994_v12 }
  0x15   :  { %930 = vmatpush.bf16.msrb.mxu0 %v4243_v52  ;;  %943 = vmatpush.bf16.msrb.mxu1 %v4247_v56  ;;  %v3860_v22 = vld [vmem:[%s7582_s1 + $0x90] sm:$0xf0]  ;;  %v4258_v23 = vld [vmem:[%s7582_s1 + $0x320] sm:$0xf]  ;;  %v5508_v26 = vld [vmem:[%s7582_s1 + $0x324] sm:$0xf]  ;;  %v3999_v28 = vor.u32 %v5443_v16, %v3996_v17  ;;  %v3859_v29 = vor.u32 %v5426_v20, %v3858_v19 }
  0x16   :  { %4354 = vmatmul.msk.bf16.vlgmr.msra.gmra.mxu2 %vm870_vm0, %v5965_v60  ;;  %4355 = vmatmul.msk.bf16.vlgmr.msra.gmra.mxu3 %vm870_vm0, %v5965_v60  ;;  %v5524_v24 = vld [vmem:[%s7582_s1 + $0x39c] sm:$0xf0]  ;;  %v4260_v27 = vld [vmem:[%s7582_s1 + $0x3a0] sm:$0xf0]  ;;  %v3866_v30 = vld [vmem:[%s7582_s1 + $0x18] sm:$0xf]  ;;  %v3863_v33 = vor.u32 %v5410_v21, %v3860_v22 }
  0x17   :  { %956 = vmatpush.bf16.msrb.mxu2 %v4251_v63  ;;  %969 = vmatpush.bf16.msrb.mxu3 %v4255_v0  ;;  %v5427_v31 = vld [vmem:[%s7582_s1 + $0x94] sm:$0xf0]  ;;  %v5411_v32 = vld [vmem:[%s7582_s1 + $0x1c] sm:$0xf]  ;;  %v4259_v35 = vor.u32 %v5524_v24, %v4258_v23  ;;  %v4266_v36 = vld [vmem:[%s7582_s1 + $0x328] sm:$0xf]  ;;  %v4263_v38 = vor.u32 %v5508_v26, %v4260_v27 }
  0x18   :  { %v3868_v34 = vld [vmem:[%s7582_s1 + $0x98] sm:$0xf0]  ;;  %v5525_v37 = vld [vmem:[%s7582_s1 + $0x3a4] sm:$0xf0]  ;;  %v5509_v39 = vld [vmem:[%s7582_s1 + $0x32c] sm:$0xf]  ;;  %v3867_v41 = vor.u32 %v5427_v31, %v3866_v30 }
  0x19   :  { %931 = vmatpush.bf16.msrb.mxu0 %v4115_v1  ;;  %944 = vmatpush.bf16.msrb.mxu1 %v4119_v5  ;;  %v4268_v40 = vld [vmem:[%s7582_s1 + $0x3a8] sm:$0xf0]  ;;  %v3871_v42 = vor.u32 %v5411_v32, %v3868_v34  ;;  %v4267_v43 = vor.u32 %v5525_v37, %v4266_v36  ;;  %v4130_v44 = vld [vmem:[%s7582_s1 + $0x220] sm:$0xf]  ;;  %v5476_v46 = vld [vmem:[%s7582_s1 + $0x224] sm:$0xf] }
  0x1a   :  { %v5492_v45 = vld [vmem:[%s7582_s1 + $0x29c] sm:$0xf0]  ;;  %v4271_v47 = vor.u32 %v5509_v39, %v4268_v40  ;;  %v4132_v48 = vld [vmem:[%s7582_s1 + $0x2a0] sm:$0xf0]  ;;  %v4138_v49 = vld [vmem:[%s7582_s1 + $0x228] sm:$0xf] }
  0x1b   :  { %957 = vmatpush.bf16.msrb.mxu2 %v4123_v11  ;;  %970 = vmatpush.bf16.msrb.mxu3 %v4127_v13  ;;  %v5493_v50 = vld [vmem:[%s7582_s1 + $0x2a4] sm:$0xf0]  ;;  %v5477_v51 = vld [vmem:[%s7582_s1 + $0x22c] sm:$0xf]  ;;  %v4131_v53 = vor.u32 %v5492_v45, %v4130_v44  ;;  %v4135_v54 = vor.u32 %v5476_v46, %v4132_v48  ;;  %v4002_v56 = vld [vmem:[%s7582_s1 + $0x120] sm:$0xf] }
  0x1c   :  { %v4140_v52 = vld [vmem:[%s7582_s1 + $0x2a8] sm:$0xf0]  ;;  %v4139_v55 = vor.u32 %v5493_v50, %v4138_v49  ;;  %v5460_v57 = vld [vmem:[%s7582_s1 + $0x19c] sm:$0xf0]  ;;  %v5444_v58 = vld [vmem:[%s7582_s1 + $0x124] sm:$0xf] }
  0x1d   :  { %932 = vmatpush.bf16.msrb.mxu0 %v3987_v14  ;;  %945 = vmatpush.bf16.msrb.mxu1 %v3991_v18  ;;  %v4143_v59 = vor.u32 %v5477_v51, %v4140_v52  ;;  %v4004_v61 = vld [vmem:[%s7582_s1 + $0x1a0] sm:$0xf0]  ;;  %v4010_v62 = vld [vmem:[%s7582_s1 + $0x128] sm:$0xf]  ;;  %v5445_v0 = vld [vmem:[%s7582_s1 + $0x12c] sm:$0xf]  ;;  %v4003_v2 = vor.u32 %v5460_v57, %v4002_v56 }
  0x1e   :  { %v5461_v63 = vld [vmem:[%s7582_s1 + $0x1a4] sm:$0xf0]  ;;  %v4012_v1 = vld [vmem:[%s7582_s1 + $0x1a8] sm:$0xf0]  ;;  %v3874_v3 = vld [vmem:[%s7582_s1 + $0x20] sm:$0xf]  ;;  %v4007_v5 = vor.u32 %v5444_v58, %v4004_v61 }
  0x1f   :  { %958 = vmatpush.bf16.msrb.mxu2 %v3995_v25  ;;  %971 = vmatpush.bf16.msrb.mxu3 %v3999_v28  ;;  %v5428_v4 = vld [vmem:[%s7582_s1 + $0x9c] sm:$0xf0]  ;;  %v4011_v6 = vor.u32 %v5461_v63, %v4010_v62  ;;  %v5412_v7 = vld [vmem:[%s7582_s1 + $0x24] sm:$0xf]  ;;  %v3882_v9 = vld [vmem:[%s7582_s1 + $0x28] sm:$0xf]  ;;  %v4015_v10 = vor.u32 %v5445_v0, %v4012_v1 }
  0x20   :  { %v3876_v8 = vld [vmem:[%s7582_s1 + $0xa0] sm:$0xf0]  ;;  %v5429_v11 = vld [vmem:[%s7582_s1 + $0xa4] sm:$0xf0]  ;;  %v5413_v12 = vld [vmem:[%s7582_s1 + $0x2c] sm:$0xf]  ;;  %v3875_v17 = vor.u32 %v5428_v4, %v3874_v3 }
  0x21   :  { %933 = vmatpush.bf16.msrb.mxu0 %v3859_v29  ;;  %946 = vmatpush.bf16.msrb.mxu1 %v3863_v33  ;;  %v3884_v13 = vld [vmem:[%s7582_s1 + $0xa8] sm:$0xf0]  ;;  %v4274_v14 = vld [vmem:[%s7582_s1 + $0x330] sm:$0xf]  ;;  %v5510_v16 = vld [vmem:[%s7582_s1 + $0x334] sm:$0xf]  ;;  %v3879_v21 = vor.u32 %v5412_v7, %v3876_v8  ;;  %v3883_v22 = vor.u32 %v5429_v11, %v3882_v9 }
  0x22   :  { %v5526_v15 = vld [vmem:[%s7582_s1 + $0x3ac] sm:$0xf0]  ;;  %v4276_v18 = vld [vmem:[%s7582_s1 + $0x3b0] sm:$0xf0]  ;;  %v4282_v19 = vld [vmem:[%s7582_s1 + $0x338] sm:$0xf]  ;;  %v3887_v25 = vor.u32 %v5413_v12, %v3884_v13 }
  0x23   :  { %959 = vmatpush.bf16.msrb.mxu2 %v3867_v41  ;;  %972 = vmatpush.bf16.msrb.mxu3 %v3871_v42  ;;  %v5527_v20 = vld [vmem:[%s7582_s1 + $0x3b4] sm:$0xf0]  ;;  %v5511_v23 = vld [vmem:[%s7582_s1 + $0x33c] sm:$0xf]  ;;  %v4275_v26 = vor.u32 %v5526_v15, %v4274_v14  ;;  %v4279_v27 = vor.u32 %v5510_v16, %v4276_v18  ;;  %v4146_v30 = vld [vmem:[%s7582_s1 + $0x230] sm:$0xf] }
  0x24   :  { %4356 = vmatmul.msk.bf16.vlgmr.msrb.gmra.mxu0 %vm870_vm0, %v5965_v60  ;;  %4357 = vmatmul.msk.bf16.vlgmr.msrb.gmra.mxu1 %vm870_vm0, %v5965_v60  ;;  %v4284_v24 = vld [vmem:[%s7582_s1 + $0x3b8] sm:$0xf0]  ;;  %v4283_v28 = vor.u32 %v5527_v20, %v4282_v19  ;;  %v5494_v31 = vld [vmem:[%s7582_s1 + $0x2ac] sm:$0xf0]  ;;  %v5478_v32 = vld [vmem:[%s7582_s1 + $0x234] sm:$0xf] }
  0x25   :  { %982 = vmatpush.bf16.msra.mxu0 %v4259_v35  ;;  %995 = vmatpush.bf16.msra.mxu1 %v4263_v38  ;;  %v4287_v29 = vor.u32 %v5511_v23, %v4284_v24  ;;  %v4148_v33 = vld [vmem:[%s7582_s1 + $0x2b0] sm:$0xf0]  ;;  %v4154_v34 = vld [vmem:[%s7582_s1 + $0x238] sm:$0xf]  ;;  %v5479_v36 = vld [vmem:[%s7582_s1 + $0x23c] sm:$0xf]  ;;  %v4147_v38 = vor.u32 %v5494_v31, %v4146_v30 }
  0x26   :  { %4358 = vmatmul.msk.bf16.vlgmr.msrb.gmra.mxu2 %vm870_vm0, %v5965_v60  ;;  %4359 = vmatmul.msk.bf16.vlgmr.msrb.gmra.mxu3 %vm870_vm0, %v5965_v60  ;;  %v5495_v35 = vld [vmem:[%s7582_s1 + $0x2b4] sm:$0xf0]  ;;  %v4156_v37 = vld [vmem:[%s7582_s1 + $0x2b8] sm:$0xf0]  ;;  %v4151_v39 = vor.u32 %v5478_v32, %v4148_v33  ;;  %v4018_v41 = vld [vmem:[%s7582_s1 + $0x130] sm:$0xf] }
  0x27   :  { %1008 = vmatpush.bf16.msra.mxu2 %v4267_v43  ;;  %1021 = vmatpush.bf16.msra.mxu3 %v4271_v47  ;;  %v4155_v40 = vor.u32 %v5495_v35, %v4154_v34  ;;  %v5462_v42 = vld [vmem:[%s7582_s1 + $0x1ac] sm:$0xf0]  ;;  %v5446_v43 = vld [vmem:[%s7582_s1 + $0x134] sm:$0xf]  ;;  %v4159_v44 = vor.u32 %v5479_v36, %v4156_v37  ;;  %v4026_v46 = vld [vmem:[%s7582_s1 + $0x138] sm:$0xf] }
  0x28   :  { %v4020_v45 = vld [vmem:[%s7582_s1 + $0x1b0] sm:$0xf0]  ;;  %v5463_v47 = vld [vmem:[%s7582_s1 + $0x1b4] sm:$0xf0]  ;;  %v5447_v48 = vld [vmem:[%s7582_s1 + $0x13c] sm:$0xf]  ;;  %v4019_v50 = vor.u32 %v5462_v42, %v4018_v41 }
  0x29   :  { %983 = vmatpush.bf16.msra.mxu0 %v4131_v53  ;;  %996 = vmatpush.bf16.msra.mxu1 %v4135_v54  ;;  %v4028_v49 = vld [vmem:[%s7582_s1 + $0x1b8] sm:$0xf0]  ;;  %v3890_v51 = vld [vmem:[%s7582_s1 + $0x30] sm:$0xf]  ;;  %v4023_v53 = vor.u32 %v5446_v43, %v4020_v45  ;;  %v4027_v54 = vor.u32 %v5463_v47, %v4026_v46  ;;  %v3892_v56 = vld [vmem:[%s7582_s1 + $0xb0] sm:$0xf0] }
  0x2a   :  { %v5430_v52 = vld [vmem:[%s7582_s1 + $0xac] sm:$0xf0]  ;;  %v3898_v57 = vld [vmem:[%s7582_s1 + $0x38] sm:$0xf]  ;;  %v4031_v58 = vor.u32 %v5447_v48, %v4028_v49  ;;  %v5415_v61 = vld [vmem:[%s7582_s1 + $0x3c] sm:$0xf] }
  0x2b   :  { %1009 = vmatpush.bf16.msra.mxu2 %v4139_v55  ;;  %1022 = vmatpush.bf16.msra.mxu3 %v4143_v59  ;;  %v5414_v55 = vld [vmem:[%s7582_s1 + $0x34] sm:$0xf]  ;;  %v5431_v59 = vld [vmem:[%s7582_s1 + $0xb4] sm:$0xf0]  ;;  %v3900_v62 = vld [vmem:[%s7582_s1 + $0xb8] sm:$0xf0] }
  0x2c   :  { %v4290_v63 = vld [vmem:[%s7582_s1 + $0x340] sm:$0xf]  ;;  %v5512_v1 = vld [vmem:[%s7582_s1 + $0x344] sm:$0xf]  ;;  %v4298_v4 = vld [vmem:[%s7582_s1 + $0x348] sm:$0xf]  ;;  %v3899_v7 = vor.u32 %v5431_v59, %v3898_v57 }
  0x2d   :  { %984 = vmatpush.bf16.msra.mxu0 %v4003_v2  ;;  %997 = vmatpush.bf16.msra.mxu1 %v4007_v5  ;;  %v5528_v0 = vld [vmem:[%s7582_s1 + $0x3bc] sm:$0xf0]  ;;  %v3891_v2 = vor.u32 %v5430_v52, %v3890_v51  ;;  %v4292_v3 = vld [vmem:[%s7582_s1 + $0x3c0] sm:$0xf0]  ;;  %v5529_v5 = vld [vmem:[%s7582_s1 + $0x3c4] sm:$0xf0] }
  0x2e   :  { %v5513_v8 = vld [vmem:[%s7582_s1 + $0x34c] sm:$0xf]  ;;  %v4291_v11 = vor.u32 %v5528_v0, %v4290_v63  ;;  %v4295_v12 = vor.u32 %v5512_v1, %v4292_v3  ;;  %v4299_v13 = vor.u32 %v5529_v5, %v4298_v4  ;;  %v4162_v15 = vld [vmem:[%s7582_s1 + $0x240] sm:$0xf]  ;;  %v4164_v18 = vld [vmem:[%s7582_s1 + $0x2c0] sm:$0xf0] }
  0x2f   :  { %1010 = vmatpush.bf16.msra.mxu2 %v4011_v6  ;;  %1023 = vmatpush.bf16.msra.mxu3 %v4015_v10  ;;  %v3895_v6 = vor.u32 %v5414_v55, %v3892_v56  ;;  %v4300_v9 = vld [vmem:[%s7582_s1 + $0x3c8] sm:$0xf0]  ;;  %v3903_v10 = vor.u32 %v5415_v61, %v3900_v62  ;;  %v5496_v16 = vld [vmem:[%s7582_s1 + $0x2bc] sm:$0xf0]  ;;  %v4170_v19 = vld [vmem:[%s7582_s1 + $0x248] sm:$0xf] }
  0x30   :  { %v4303_v14 = vor.u32 %v5513_v8, %v4300_v9  ;;  %v5497_v20 = vld [vmem:[%s7582_s1 + $0x2c4] sm:$0xf0]  ;;  %v4163_v23 = vor.u32 %v5496_v16, %v4162_v15  ;;  %v4036_v30 = vld [vmem:[%s7582_s1 + $0x1c0] sm:$0xf0]  ;;  %v5449_v33 = vld [vmem:[%s7582_s1 + $0x14c] sm:$0xf] }
  0x31   :  { %985 = vmatpush.bf16.msra.mxu0 %v3875_v17  ;;  %998 = vmatpush.bf16.msra.mxu1 %v3879_v21  ;;  %v5480_v17 = vld [vmem:[%s7582_s1 + $0x244] sm:$0xf]  ;;  %v5481_v21 = vld [vmem:[%s7582_s1 + $0x24c] sm:$0xf]  ;;  %v4042_v31 = vld [vmem:[%s7582_s1 + $0x148] sm:$0xf] }
  0x32   :  { %v4167_v24 = vor.u32 %v5480_v17, %v4164_v18  ;;  %v5465_v32 = vld [vmem:[%s7582_s1 + $0x1c4] sm:$0xf0]  ;;  %v4044_v34 = vld [vmem:[%s7582_s1 + $0x1c8] sm:$0xf0]  ;;  %v3906_v36 = vld [vmem:[%s7582_s1 + $0x40] sm:$0xf] }
  0x33   :  { %1011 = vmatpush.bf16.msra.mxu2 %v3883_v22  ;;  %1024 = vmatpush.bf16.msra.mxu3 %v3887_v25  ;;  %v4172_v22 = vld [vmem:[%s7582_s1 + $0x2c8] sm:$0xf0]  ;;  %v4171_v25 = vor.u32 %v5497_v20, %v4170_v19  ;;  %v5432_v37 = vld [vmem:[%s7582_s1 + $0xbc] sm:$0xf0]  ;;  %v3908_v41 = vld [vmem:[%s7582_s1 + $0xc0] sm:$0xf0]  ;;  %v4047_v43 = vor.u32 %v5449_v33, %v4044_v34 }
  0x34   :  { %4360 = vmatmul.msk.bf16.vlgmr.msra.gmra.mxu0 %vm870_vm0, %v5965_v60  ;;  %4361 = vmatmul.msk.bf16.vlgmr.msra.gmra.mxu1 %vm870_vm0, %v5965_v60  ;;  %v3914_v42 = vld [vmem:[%s7582_s1 + $0x48] sm:$0xf]  ;;  %v5417_v45 = vld [vmem:[%s7582_s1 + $0x4c] sm:$0xf]  ;;  %v4306_v47 = vld [vmem:[%s7582_s1 + $0x350] sm:$0xf] }
  0x35   :  { %1034 = vmatpush.bf16.msrb.mxu0 %v4275_v26  ;;  %1047 = vmatpush.bf16.msrb.mxu1 %v4279_v27  ;;  %v4034_v26 = vld [vmem:[%s7582_s1 + $0x140] sm:$0xf]  ;;  %v3916_v46 = vld [vmem:[%s7582_s1 + $0xc8] sm:$0xf0]  ;;  %v5530_v48 = vld [vmem:[%s7582_s1 + $0x3cc] sm:$0xf0] }
  0x36   :  { %4362 = vmatmul.msk.bf16.vlgmr.msra.gmra.mxu2 %vm870_vm0, %v5965_v60  ;;  %4363 = vmatmul.msk.bf16.vlgmr.msra.gmra.mxu3 %vm870_vm0, %v5965_v60  ;;  %v5464_v27 = vld [vmem:[%s7582_s1 + $0x1bc] sm:$0xf0]  ;;  %v5514_v49 = vld [vmem:[%s7582_s1 + $0x354] sm:$0xf]  ;;  %v4314_v52 = vld [vmem:[%s7582_s1 + $0x358] sm:$0xf]  ;;  %v4307_v59 = vor.u32 %v5530_v48, %v4306_v47 }
  0x37   :  { %1060 = vmatpush.bf16.msrb.mxu2 %v4283_v28  ;;  %1073 = vmatpush.bf16.msrb.mxu3 %v4287_v29  ;;  %v5448_v28 = vld [vmem:[%s7582_s1 + $0x144] sm:$0xf]  ;;  %v4175_v29 = vor.u32 %v5481_v21, %v4172_v22  ;;  %v4035_v35 = vor.u32 %v5464_v27, %v4034_v26  ;;  %v4308_v51 = vld [vmem:[%s7582_s1 + $0x3d0] sm:$0xf0]  ;;  %v5515_v56 = vld [vmem:[%s7582_s1 + $0x35c] sm:$0xf] }
  0x38   :  { %v4316_v57 = vld [vmem:[%s7582_s1 + $0x3d8] sm:$0xf0]  ;;  %v4311_v61 = vor.u32 %v5514_v49, %v4308_v51  ;;  %v4178_v63 = vld [vmem:[%s7582_s1 + $0x250] sm:$0xf]  ;;  %v5482_v1 = vld [vmem:[%s7582_s1 + $0x254] sm:$0xf] }
  0x39   :  { %1035 = vmatpush.bf16.msrb.mxu0 %v4147_v38  ;;  %1048 = vmatpush.bf16.msrb.mxu1 %v4151_v39  ;;  %v4039_v38 = vor.u32 %v5448_v28, %v4036_v30  ;;  %v4043_v39 = vor.u32 %v5465_v32, %v4042_v31  ;;  %v5498_v0 = vld [vmem:[%s7582_s1 + $0x2cc] sm:$0xf0]  ;;  %v4180_v3 = vld [vmem:[%s7582_s1 + $0x2d0] sm:$0xf0]  ;;  %v4186_v4 = vld [vmem:[%s7582_s1 + $0x258] sm:$0xf] }
  0x3a   :  { %v5499_v5 = vld [vmem:[%s7582_s1 + $0x2d4] sm:$0xf0]  ;;  %v4179_v8 = vor.u32 %v5498_v0, %v4178_v63  ;;  %v4183_v9 = vor.u32 %v5482_v1, %v4180_v3  ;;  %v4052_v15 = vld [vmem:[%s7582_s1 + $0x1d0] sm:$0xf0]  ;;  %v5451_v18 = vld [vmem:[%s7582_s1 + $0x15c] sm:$0xf] }
  0x3b   :  { %1061 = vmatpush.bf16.msrb.mxu2 %v4155_v40  ;;  %1074 = vmatpush.bf16.msrb.mxu3 %v4159_v44  ;;  %v5416_v40 = vld [vmem:[%s7582_s1 + $0x44] sm:$0xf]  ;;  %v5433_v44 = vld [vmem:[%s7582_s1 + $0xc4] sm:$0xf0]  ;;  %v4058_v16 = vld [vmem:[%s7582_s1 + $0x158] sm:$0xf] }
  0x3c   :  { %v3915_v55 = vor.u32 %v5433_v44, %v3914_v42  ;;  %v5467_v17 = vld [vmem:[%s7582_s1 + $0x1d4] sm:$0xf0]  ;;  %v4060_v19 = vld [vmem:[%s7582_s1 + $0x1d8] sm:$0xf0]  ;;  %v3922_v21 = vld [vmem:[%s7582_s1 + $0x50] sm:$0xf] }
  0x3d   :  { %1036 = vmatpush.bf16.msrb.mxu0 %v4019_v50  ;;  %1049 = vmatpush.bf16.msrb.mxu1 %v4023_v53  ;;  %v3907_v50 = vor.u32 %v5432_v37, %v3906_v36  ;;  %v5531_v53 = vld [vmem:[%s7582_s1 + $0x3d4] sm:$0xf0]  ;;  %v5434_v22 = vld [vmem:[%s7582_s1 + $0xcc] sm:$0xf0]  ;;  %v3924_v26 = vld [vmem:[%s7582_s1 + $0xd0] sm:$0xf0]  ;;  %v4063_v28 = vor.u32 %v5451_v18, %v4060_v19 }
  0x3e   :  { %v4315_v62 = vor.u32 %v5531_v53, %v4314_v52  ;;  %v3930_v27 = vld [vmem:[%s7582_s1 + $0x58] sm:$0xf]  ;;  %v5419_v30 = vld [vmem:[%s7582_s1 + $0x5c] sm:$0xf]  ;;  %v4322_v32 = vld [vmem:[%s7582_s1 + $0x360] sm:$0xf] }
  0x3f   :  { %1062 = vmatpush.bf16.msrb.mxu2 %v4027_v54  ;;  %1075 = vmatpush.bf16.msrb.mxu3 %v4031_v58  ;;  %v3911_v54 = vor.u32 %v5416_v40, %v3908_v41  ;;  %v3919_v58 = vor.u32 %v5417_v45, %v3916_v46  ;;  %v3932_v31 = vld [vmem:[%s7582_s1 + $0xd8] sm:$0xf0]  ;;  %v5532_v33 = vld [vmem:[%s7582_s1 + $0x3dc] sm:$0xf0]  ;;  %v5516_v34 = vld [vmem:[%s7582_s1 + $0x364] sm:$0xf] }
  0x40   :  { %v4324_v36 = vld [vmem:[%s7582_s1 + $0x3e0] sm:$0xf0]  ;;  %v4330_v37 = vld [vmem:[%s7582_s1 + $0x368] sm:$0xf]  ;;  %v5517_v41 = vld [vmem:[%s7582_s1 + $0x36c] sm:$0xf]  ;;  %v4323_v44 = vor.u32 %v5532_v33, %v4322_v32 }
  0x41   :  { %1037 = vmatpush.bf16.msrb.mxu0 %v3891_v2  ;;  %1050 = vmatpush.bf16.msrb.mxu1 %v3895_v6  ;;  %v4319_v2 = vor.u32 %v5515_v56, %v4316_v57  ;;  %v5483_v6 = vld [vmem:[%s7582_s1 + $0x25c] sm:$0xf]  ;;  %v4332_v42 = vld [vmem:[%s7582_s1 + $0x3e8] sm:$0xf0]  ;;  %v4327_v45 = vor.u32 %v5516_v34, %v4324_v36  ;;  %v4194_v47 = vld [vmem:[%s7582_s1 + $0x260] sm:$0xf] }
  0x42   :  { %v5500_v48 = vld [vmem:[%s7582_s1 + $0x2dc] sm:$0xf0]  ;;  %v5484_v49 = vld [vmem:[%s7582_s1 + $0x264] sm:$0xf]  ;;  %v4202_v52 = vld [vmem:[%s7582_s1 + $0x268] sm:$0xf] }
  0x43   :  { %1063 = vmatpush.bf16.msrb.mxu2 %v3899_v7  ;;  %1076 = vmatpush.bf16.msrb.mxu3 %v3903_v10  ;;  %v4188_v7 = vld [vmem:[%s7582_s1 + $0x2d8] sm:$0xf0]  ;;  %v4187_v10 = vor.u32 %v5499_v5, %v4186_v4  ;;  %v4196_v51 = vld [vmem:[%s7582_s1 + $0x2e0] sm:$0xf0]  ;;  %v5501_v53 = vld [vmem:[%s7582_s1 + $0x2e4] sm:$0xf0]  ;;  %v4195_v56 = vor.u32 %v5500_v48, %v4194_v47 }
  0x44   :  { %4364 = vmatmul.msk.bf16.vlgmr.msrb.gmra.mxu0 %vm870_vm0, %v5965_v60  ;;  %4365 = vmatmul.msk.bf16.vlgmr.msrb.gmra.mxu1 %vm870_vm0, %v5965_v60  ;;  %v4199_v57 = vor.u32 %v5484_v49, %v4196_v51  ;;  %v4068_v0 = vld [vmem:[%s7582_s1 + $0x1e0] sm:$0xf0]  ;;  %v4074_v1 = vld [vmem:[%s7582_s1 + $0x168] sm:$0xf]  ;;  %v5453_v3 = vld [vmem:[%s7582_s1 + $0x16c] sm:$0xf] }
  0x45   :  { %1086 = vmatpush.bf16.msra.mxu0 %v4291_v11  ;;  %1099 = vmatpush.bf16.msra.mxu1 %v4295_v12  ;;  %v4050_v11 = vld [vmem:[%s7582_s1 + $0x150] sm:$0xf]  ;;  %v4076_v4 = vld [vmem:[%s7582_s1 + $0x1e8] sm:$0xf0]  ;;  %v5518_v19 = vld [vmem:[%s7582_s1 + $0x374] sm:$0xf] }
  0x46   :  { %4366 = vmatmul.msk.bf16.vlgmr.msrb.gmra.mxu2 %vm870_vm0, %v5965_v60  ;;  %4367 = vmatmul.msk.bf16.vlgmr.msrb.gmra.mxu3 %vm870_vm0, %v5965_v60  ;;  %v5466_v12 = vld [vmem:[%s7582_s1 + $0x1cc] sm:$0xf0]  ;;  %v5486_v34 = vld [vmem:[%s7582_s1 + $0x274] sm:$0xf]  ;;  %v4090_v49 = vld [vmem:[%s7582_s1 + $0x178] sm:$0xf] }
  0x47   :  { %1112 = vmatpush.bf16.msra.mxu2 %v4299_v13  ;;  %1125 = vmatpush.bf16.msra.mxu3 %v4303_v14  ;;  %v5450_v13 = vld [vmem:[%s7582_s1 + $0x154] sm:$0xf]  ;;  %v4191_v14 = vor.u32 %v5483_v6, %v4188_v7  ;;  %v4051_v20 = vor.u32 %v5466_v12, %v4050_v11  ;;  %v3938_v6 = vld [vmem:[%s7582_s1 + $0x60] sm:$0xf]  ;;  %v3940_v11 = vld [vmem:[%s7582_s1 + $0xe0] sm:$0xf0] }
  0x48   :  { %v5436_v7 = vld [vmem:[%s7582_s1 + $0xdc] sm:$0xf0]  ;;  %v3946_v12 = vld [vmem:[%s7582_s1 + $0x68] sm:$0xf]  ;;  %v5534_v18 = vld [vmem:[%s7582_s1 + $0x3ec] sm:$0xf0] }
  0x49   :  { %1087 = vmatpush.bf16.msra.mxu0 %v4163_v23  ;;  %1100 = vmatpush.bf16.msra.mxu1 %v4167_v24  ;;  %v4055_v23 = vor.u32 %v5450_v13, %v4052_v15  ;;  %v4059_v24 = vor.u32 %v5467_v17, %v4058_v16  ;;  %v4079_v13 = vor.u32 %v5453_v3, %v4076_v4  ;;  %v5421_v15 = vld [vmem:[%s7582_s1 + $0x6c] sm:$0xf]  ;;  %v4338_v17 = vld [vmem:[%s7582_s1 + $0x370] sm:$0xf]  ;;  %v4212_v36 = vld [vmem:[%s7582_s1 + $0x2f0] sm:$0xf0] }
  0x4a   :  { %v3948_v16 = vld [vmem:[%s7582_s1 + $0xe8] sm:$0xf0]  ;;  %v4210_v32 = vld [vmem:[%s7582_s1 + $0x270] sm:$0xf]  ;;  %v4084_v48 = vld [vmem:[%s7582_s1 + $0x1f0] sm:$0xf0] }
  0x4b   :  { %1113 = vmatpush.bf16.msra.mxu2 %v4171_v25  ;;  %1126 = vmatpush.bf16.msra.mxu3 %v4175_v29  ;;  %v5418_v25 = vld [vmem:[%s7582_s1 + $0x54] sm:$0xf]  ;;  %v5435_v29 = vld [vmem:[%s7582_s1 + $0xd4] sm:$0xf0]  ;;  %v5502_v33 = vld [vmem:[%s7582_s1 + $0x2ec] sm:$0xf0] }
  0x4c   :  { %v3931_v40 = vor.u32 %v5435_v29, %v3930_v27  ;;  %v4348_v27 = vld [vmem:[%s7582_s1 + $0x3f8] sm:$0xf0]  ;;  %v4339_v29 = vor.u32 %v5534_v18, %v4338_v17  ;;  %v5565_v17 = vld [vmem:[%s7584_s3 + $0xe8] sm:$0xff]  ;;  %v5540_v18 = vld [vmem:[%s7584_s3 + $0x20] sm:$0xff] }
  0x4d   :  { %1088 = vmatpush.bf16.msra.mxu0 %v4035_v35  ;;  %1101 = vmatpush.bf16.msra.mxu1 %v4039_v38  ;;  %v3923_v35 = vor.u32 %v5434_v22, %v3922_v21  ;;  %v5533_v38 = vld [vmem:[%s7582_s1 + $0x3e4] sm:$0xf0]  ;;  %v4340_v21 = vld [vmem:[%s7582_s1 + $0x3f0] sm:$0xf0]  ;;  %v4346_v22 = vld [vmem:[%s7582_s1 + $0x378] sm:$0xf] }
  0x4e   :  { %v4331_v46 = vor.u32 %v5533_v38, %v4330_v37  ;;  %v4218_v37 = vld [vmem:[%s7582_s1 + $0x278] sm:$0xf]  ;;  %v5455_v51 = vld [vmem:[%s7582_s1 + $0x17c] sm:$0xf] }
  0x4f   :  { %1114 = vmatpush.bf16.msra.mxu2 %v4043_v39  ;;  %1127 = vmatpush.bf16.msra.mxu3 %v4047_v43  ;;  %v3927_v39 = vor.u32 %v5418_v25, %v3924_v26  ;;  %v3935_v43 = vor.u32 %v5419_v30, %v3932_v31  ;;  %v5519_v26 = vld [vmem:[%s7582_s1 + $0x37c] sm:$0xf]  ;;  %v4343_v30 = vor.u32 %v5518_v19, %v4340_v21  ;;  %v5503_v38 = vld [vmem:[%s7582_s1 + $0x2f4] sm:$0xf0]  ;;  %v5548_v19 = vld [vmem:[%s7584_s3 + $0x60] sm:$0xff] }
  0x50   :  { %v5564_v21 = vld [vmem:[%s7584_s3 + $0xe0] sm:$0xff] }
  0x51   :  { %1089 = vmatpush.bf16.msra.mxu0 %v3907_v50  ;;  %1102 = vmatpush.bf16.msra.mxu1 %v3911_v54  ;;  %v4335_v50 = vor.u32 %v5517_v41, %v4332_v42  ;;  %v5485_v54 = vld [vmem:[%s7582_s1 + $0x26c] sm:$0xf]  ;;  %v4211_v41 = vor.u32 %v5502_v33, %v4210_v32  ;;  %v4215_v42 = vor.u32 %v5486_v34, %v4212_v36 }
  0x52   :  { %v5537_v33 = vld [vmem:[%s7584_s3 + $0x8] sm:$0xff] }
  0x53   :  { %1115 = vmatpush.bf16.msra.mxu2 %v3915_v55  ;;  %1128 = vmatpush.bf16.msra.mxu3 %v3919_v58  ;;  %v4204_v55 = vld [vmem:[%s7582_s1 + $0x2e8] sm:$0xf0]  ;;  %v4203_v58 = vor.u32 %v5501_v53, %v4202_v52  ;;  %v4092_v52 = vld [vmem:[%s7582_s1 + $0x1f8] sm:$0xf0] }
  0x54   :  { %4368 = vmatmul.msk.bf16.vlgmr.msra.gmra.mxu0 %vm870_vm0, %v5965_v60  ;;  %4369 = vmatmul.msk.bf16.vlgmr.msra.gmra.mxu1 %vm870_vm0, %v5965_v60  ;;  %v4207_v63 = vor.u32 %v5485_v54, %v4204_v55  ;;  %v5545_v34 = vld [vmem:[%s7584_s3 + $0x48] sm:$0xff] }
  0x55   :  { %1138 = vmatpush.bf16.msrb.mxu0 %v4307_v59  ;;  %1151 = vmatpush.bf16.msrb.mxu1 %v4311_v61  ;;  %v4066_v59 = vld [vmem:[%s7582_s1 + $0x160] sm:$0xf] }
  0x56   :  { %4370 = vmatmul.msk.bf16.vlgmr.msra.gmra.mxu2 %vm870_vm0, %v5965_v60  ;;  %4371 = vmatmul.msk.bf16.vlgmr.msra.gmra.mxu3 %vm870_vm0, %v5965_v60  ;;  %v5468_v61 = vld [vmem:[%s7582_s1 + $0x1dc] sm:$0xf0] }
  0x57   :  { %1164 = vmatpush.bf16.msrb.mxu2 %v4315_v62  ;;  %1177 = vmatpush.bf16.msrb.mxu3 %v4319_v2  ;;  %v5452_v62 = vld [vmem:[%s7582_s1 + $0x164] sm:$0xf]  ;;  %v5469_v2 = vld [vmem:[%s7582_s1 + $0x1e4] sm:$0xf0]  ;;  %v4067_v5 = vor.u32 %v5468_v61, %v4066_v59  ;;  %v4095_v59 = vor.u32 %v5455_v51, %v4092_v52  ;;  %v3956_v61 = vld [vmem:[%s7582_s1 + $0xf0] sm:$0xf0] }
  0x58   :  { %v5591_v51 = vld [vmem:[%s7584_s3 + $0x1b8] sm:$0xff] }
  0x59   :  { %1139 = vmatpush.bf16.msrb.mxu0 %v4179_v8  ;;  %1152 = vmatpush.bf16.msrb.mxu1 %v4183_v9  ;;  %v4071_v8 = vor.u32 %v5452_v62, %v4068_v0  ;;  %v4075_v9 = vor.u32 %v5469_v2, %v4074_v1  ;;  %v3962_v62 = vld [vmem:[%s7582_s1 + $0x78] sm:$0xf]  ;;  %v5423_v0 = vld [vmem:[%s7582_s1 + $0x7c] sm:$0xf] }
  0x5a   :  { %v3964_v1 = vld [vmem:[%s7582_s1 + $0xf8] sm:$0xf0] }
  0x5b   :  { %1165 = vmatpush.bf16.msrb.mxu2 %v4187_v10  ;;  %1178 = vmatpush.bf16.msrb.mxu3 %v4191_v14  ;;  %v5420_v10 = vld [vmem:[%s7582_s1 + $0x64] sm:$0xf]  ;;  %v5437_v14 = vld [vmem:[%s7582_s1 + $0xe4] sm:$0xf0] }
  0x5c   :  { %v3947_v25 = vor.u32 %v5437_v14, %v3946_v12  ;;  %v5558_v12 = vld [vmem:[%s7584_s3 + $0xb0] sm:$0xff]  ;;  %v5541_v14 = vld [vmem:[%s7584_s3 + $0x28] sm:$0xff] }
  0x5d   :  { %1140 = vmatpush.bf16.msrb.mxu0 %v4051_v20  ;;  %1153 = vmatpush.bf16.msrb.mxu1 %v4055_v23  ;;  %v3939_v20 = vor.u32 %v5436_v7, %v3938_v6  ;;  %v5535_v23 = vld [vmem:[%s7582_s1 + $0x3f4] sm:$0xf0] }
  0x5e   :  { %v4347_v31 = vor.u32 %v5535_v23, %v4346_v22  ;;  %v5543_v6 = vld [vmem:[%s7584_s3 + $0x38] sm:$0xff] }
  0x5f   :  { %1166 = vmatpush.bf16.msrb.mxu2 %v4059_v24  ;;  %1179 = vmatpush.bf16.msrb.mxu3 %v4063_v28  ;;  %v3943_v24 = vor.u32 %v5420_v10, %v3940_v11  ;;  %v3951_v28 = vor.u32 %v5421_v15, %v3948_v16  ;;  %v5551_v7 = vld [vmem:[%s7584_s3 + $0x78] sm:$0xff]  ;;  %v5542_v10 = vld [vmem:[%s7584_s3 + $0x30] sm:$0xff]  ;;  %v5549_v15 = vld [vmem:[%s7584_s3 + $0x68] sm:$0xff] }
  0x60   :  { %v5550_v11 = vld [vmem:[%s7584_s3 + $0x70] sm:$0xff]  ;;  %v5557_v16 = vld [vmem:[%s7584_s3 + $0xa8] sm:$0xff]  ;;  %v5539_v22 = vld [vmem:[%s7584_s3 + $0x18] sm:$0xff] }
  0x61   :  { %1141 = vmatpush.bf16.msrb.mxu0 %v3923_v35  ;;  %1154 = vmatpush.bf16.msrb.mxu1 %v3927_v39  ;;  %v4351_v35 = vor.u32 %v5519_v26, %v4348_v27  ;;  %v5487_v39 = vld [vmem:[%s7582_s1 + $0x27c] sm:$0xf]  ;;  %v6734_v26 = vld [vmem:[%s7585_s2] sm:$0xff]  ;;  %v5538_v27 = vld [vmem:[%s7584_s3 + $0x10] sm:$0xff] }
  0x62   :  { %v5547_v23 = vld [vmem:[%s7584_s3 + $0x58] sm:$0xff]  ;;  %v167_v32 = vperm.slane %v6734_v26, 1 }
  0x63   :  { %1167 = vmatpush.bf16.msrb.mxu2 %v3931_v40  ;;  %1180 = vmatpush.bf16.msrb.mxu3 %v3935_v43  ;;  %v4220_v40 = vld [vmem:[%s7582_s1 + $0x2f8] sm:$0xf0]  ;;  %v4219_v43 = vor.u32 %v5503_v38, %v4218_v37  ;;  %v5561_v37 = vld [vmem:[%s7584_s3 + $0xc8] sm:$0xff] }
  0x64   :  { %4372 = vmatmul.msk.bf16.vlgmr.msrb.gmra.mxu0 %vm870_vm0, %v5965_v60  ;;  %4373 = vmatmul.msk.bf16.vlgmr.msrb.gmra.mxu1 %vm870_vm0, %v5965_v60  ;;  %v4223_v47 = vor.u32 %v5487_v39, %v4220_v40 }
  0x65   :  { %1190 = vmatpush.bf16.msra.mxu0 %v4323_v44  ;;  %1203 = vmatpush.bf16.msra.mxu1 %v4327_v45  ;;  %v4082_v44 = vld [vmem:[%s7582_s1 + $0x170] sm:$0xf] }
  0x66   :  { %4374 = vmatmul.msk.bf16.vlgmr.msrb.gmra.mxu2 %vm870_vm0, %v5965_v60  ;;  %4375 = vmatmul.msk.bf16.vlgmr.msrb.gmra.mxu3 %vm870_vm0, %v5965_v60  ;;  %v5470_v45 = vld [vmem:[%s7582_s1 + $0x1ec] sm:$0xf0] }
  0x67   :  { %1216 = vmatpush.bf16.msra.mxu2 %v4331_v46  ;;  %1229 = vmatpush.bf16.msra.mxu3 %v4335_v50  ;;  %v5454_v46 = vld [vmem:[%s7582_s1 + $0x174] sm:$0xf]  ;;  %v5471_v50 = vld [vmem:[%s7582_s1 + $0x1f4] sm:$0xf0]  ;;  %v4083_v53 = vor.u32 %v5470_v45, %v4082_v44  ;;  %v5552_v44 = vld [vmem:[%s7584_s3 + $0x80] sm:$0xff] }
  0x68   :  { %v4087_v54 = vor.u32 %v5454_v46, %v4084_v48  ;;  %v4091_v55 = vor.u32 %v5471_v50, %v4090_v49  ;;  %v168_v46 = vperm.slane %v6734_v26, 2  ;;  %v5575_v48 = vld [vmem:[%s7584_s3 + $0x138] sm:$0xff]  ;;  %v169_v49 = vperm.slane %v6734_v26, 3 }
  0x69   :  { %1191 = vmatpush.bf16.msra.mxu0 %v4195_v56  ;;  %1204 = vmatpush.bf16.msra.mxu1 %v4199_v57  ;;  %v3954_v56 = vld [vmem:[%s7582_s1 + $0x70] sm:$0xf]  ;;  %v5583_v50 = vld [vmem:[%s7584_s3 + $0x178] sm:$0xff] }
  0x6a   :  { %v5438_v57 = vld [vmem:[%s7582_s1 + $0xec] sm:$0xf0] }
  0x6b   :  { %1217 = vmatpush.bf16.msra.mxu2 %v4203_v58  ;;  %1230 = vmatpush.bf16.msra.mxu3 %v4207_v63  ;;  %v5422_v58 = vld [vmem:[%s7582_s1 + $0x74] sm:$0xf]  ;;  %v5439_v63 = vld [vmem:[%s7582_s1 + $0xf4] sm:$0xf0]  ;;  %v3955_v2 = vor.u32 %v5438_v57, %v3954_v56 }
  0x6c   :  { %v3959_v3 = vor.u32 %v5422_v58, %v3956_v61  ;;  %v3963_v4 = vor.u32 %v5439_v63, %v3962_v62  ;;  %v5582_v63 = vld [vmem:[%s7584_s3 + $0x170] sm:$0xff] }
  0x6d   :  { %1192 = vmatpush.bf16.msra.mxu0 %v4067_v5  ;;  %1205 = vmatpush.bf16.msra.mxu1 %v4071_v8  ;;  %v3967_v5 = vor.u32 %v5423_v0, %v3964_v1  ;;  %v5559_v8 = vld [vmem:[%s7584_s3 + $0xb8] sm:$0xff]  ;;  %v5590_v0 = vld [vmem:[%s7584_s3 + $0x1b0] sm:$0xff] }
  0x6f   :  { %1218 = vmatpush.bf16.msra.mxu2 %v4075_v9  ;;  %1231 = vmatpush.bf16.msra.mxu3 %v4079_v13  ;;  %v5567_v9 = vld [vmem:[%s7584_s3 + $0xf8] sm:$0xff]  ;;  %v5566_v13 = vld [vmem:[%s7584_s3 + $0xf0] sm:$0xff] }
  0x71   :  { %1193 = vmatpush.bf16.msra.mxu0 %v3939_v20  ;;  %1206 = vmatpush.bf16.msra.mxu1 %v3943_v24  ;;  %v5556_v20 = vld [vmem:[%s7584_s3 + $0xa0] sm:$0xff]  ;;  %v5555_v24 = vld [vmem:[%s7584_s3 + $0x98] sm:$0xff] }
  0x73   :  { %1219 = vmatpush.bf16.msra.mxu2 %v3947_v25  ;;  %1232 = vmatpush.bf16.msra.mxu3 %v3951_v28  ;;  %v5563_v25 = vld [vmem:[%s7584_s3 + $0xd8] sm:$0xff]  ;;  %v5795_v28 = vld [vmem:[%s7583_s0] sm:$0xf] }
  0x74   :  { %4376 = vmatmul.msk.bf16.vlgmr.msra.gmra.mxu0 %vm870_vm0, %v5965_v60  ;;  %4377 = vmatmul.msk.bf16.vlgmr.msra.gmra.mxu1 %vm870_vm0, %v5965_v60 }
  0x75   :  { %1242 = vmatpush.bf16.msrb.mxu0 %v4339_v29  ;;  %1255 = vmatpush.bf16.msrb.mxu1 %v4343_v30  ;;  %v5554_v29 = vld [vmem:[%s7584_s3 + $0x90] sm:$0xff] }
  0x76   :  { %4378 = vmatmul.msk.bf16.vlgmr.msra.gmra.mxu2 %vm870_vm0, %v5965_v60  ;;  %4379 = vmatmul.msk.bf16.vlgmr.msra.gmra.mxu3 %vm870_vm0, %v5965_v60  ;;  %v5562_v30 = vld [vmem:[%s7584_s3 + $0xd0] sm:$0xff] }
  0x77   :  { %1268 = vmatpush.bf16.msrb.mxu2 %v4347_v31  ;;  %1281 = vmatpush.bf16.msrb.mxu3 %v4351_v35  ;;  %v166_v31 = vperm.slane %v6734_v26, 0  ;;  %v5553_v35 = vld [vmem:[%s7584_s3 + $0x88] sm:$0xff] }
  0x79   :  { %1243 = vmatpush.bf16.msrb.mxu0 %v4211_v41  ;;  %1256 = vmatpush.bf16.msrb.mxu1 %v4215_v42  ;;  %v5536_v41 = vld [vmem:[%s7584_s3] sm:$0xff] }
  0x7b   :  { %1269 = vmatpush.bf16.msrb.mxu2 %v4219_v43  ;;  %1282 = vmatpush.bf16.msrb.mxu3 %v4223_v47  ;;  %v5544_v43 = vld [vmem:[%s7584_s3 + $0x40] sm:$0xff] }
  0x7c   :  { %v5560_v47 = vld [vmem:[%s7584_s3 + $0xc0] sm:$0xff] }
  0x7d   :  { %1244 = vmatpush.bf16.msrb.mxu0 %v4083_v53  ;;  %1257 = vmatpush.bf16.msrb.mxu1 %v4087_v54  ;;  %v5599_v53 = vld [vmem:[%s7584_s3 + $0x1f8] sm:$0xff] }
  0x7f   :  { %1270 = vmatpush.bf16.msrb.mxu2 %v4091_v55  ;;  %1283 = vmatpush.bf16.msrb.mxu3 %v4095_v59  ;;  %v5574_v59 = vld [vmem:[%s7584_s3 + $0x130] sm:$0xff] }
  0x81   :  { %1245 = vmatpush.bf16.msrb.mxu0 %v3955_v2  ;;  %1258 = vmatpush.bf16.msrb.mxu1 %v3959_v3  ;;  %v5598_v2 = vld [vmem:[%s7584_s3 + $0x1f0] sm:$0xff] }
  0x83   :  { %1271 = vmatpush.bf16.msrb.mxu2 %v3963_v4  ;;  %1284 = vmatpush.bf16.msrb.mxu3 %v3967_v5 }
  0x84   :  { %4380 = vmatmul.msk.bf16.vlgmr.msrb.gmra.mxu0 %vm870_vm0, %v5965_v60  ;;  %4381 = vmatmul.msk.bf16.vlgmr.msrb.gmra.mxu1 %vm870_vm0, %v5965_v60 }
  0x85   :  { %3406 = vmatpush.bf16.msra.mxu0 %v5543_v6  ;;  %3419 = vmatpush.bf16.msra.mxu1 %v5551_v7  ;;  %v5573_v6 = vld [vmem:[%s7584_s3 + $0x128] sm:$0xff] }
  0x86   :  { %4382 = vmatmul.msk.bf16.vlgmr.msrb.gmra.mxu2 %vm870_vm0, %v5965_v60  ;;  %4383 = vmatmul.msk.bf16.vlgmr.msrb.gmra.mxu3 %vm870_vm0, %v5795_v28  ;;  %v5546_v60 = vld [vmem:[%s7584_s3 + $0x50] sm:$0xff]  ;;  %v5581_v7 = vld [vmem:[%s7584_s3 + $0x168] sm:$0xff] }
  0x87   :  { %3432 = vmatpush.bf16.msra.mxu2 %v5559_v8  ;;  %3445 = vmatpush.bf16.msra.mxu3 %v5567_v9  ;;  %v5589_v8 = vld [vmem:[%s7584_s3 + $0x1a8] sm:$0xff]  ;;  %v5578_v28 = vld [vmem:[%s7584_s3 + $0x150] sm:$0xff] }
  0x88   :  { %v5597_v9 = vld [vmem:[%s7584_s3 + $0x1e8] sm:$0xff] }
  0x89   :  { %3407 = vmatpush.bf16.msra.mxu0 %v5542_v10  ;;  %3420 = vmatpush.bf16.msra.mxu1 %v5550_v11 }
  0x8b   :  { %3433 = vmatpush.bf16.msra.mxu2 %v5558_v12  ;;  %3446 = vmatpush.bf16.msra.mxu3 %v5566_v13  ;;  %v5572_v13 = vld [vmem:[%s7584_s3 + $0x120] sm:$0xff] }
  0x8d   :  { %3408 = vmatpush.bf16.msra.mxu0 %v5541_v14  ;;  %3421 = vmatpush.bf16.msra.mxu1 %v5549_v15  ;;  %v5580_v15 = vld [vmem:[%s7584_s3 + $0x160] sm:$0xff] }
  0x8f   :  { %3434 = vmatpush.bf16.msra.mxu2 %v5557_v16  ;;  %3447 = vmatpush.bf16.msra.mxu3 %v5565_v17  ;;  %v5588_v16 = vld [vmem:[%s7584_s3 + $0x1a0] sm:$0xff] }
  0x90   :  { %v5596_v17 = vld [vmem:[%s7584_s3 + $0x1e0] sm:$0xff] }
  0x91   :  { %3409 = vmatpush.bf16.msra.mxu0 %v5540_v18  ;;  %3422 = vmatpush.bf16.msra.mxu1 %v5548_v19  ;;  %v883_v36 = vpop.f32.mrf.mxu0  ;;  %v896_v39 = vpop.f32.mrf.mxu1  ;;  %v5571_v18 = vld [vmem:[%s7584_s3 + $0x118] sm:$0xff] }
  0x92   :  { %v884_v38 = vadd.f32 %v883_v36, %v166_v31  ;;  %v897_v40 = vadd.f32 %v896_v39, %v167_v32  ;;  %v5579_v19 = vld [vmem:[%s7584_s3 + $0x158] sm:$0xff]  ;;  %v173_v31 = vperm.slane %v6734_v26, 7  ;;  %v171_v32 = vperm.slane %v6734_v26, 5  ;;  %v5585_v36 = vld [vmem:[%s7584_s3 + $0x188] sm:$0xff] }
  0x93   :  { %3435 = vmatpush.bf16.msra.mxu2 %v5556_v20  ;;  %3448 = vmatpush.bf16.msra.mxu3 %v5564_v21  ;;  %v5587_v20 = vld [vmem:[%s7584_s3 + $0x198] sm:$0xff] }
  0x94   :  { %v1290_v42 = vmax.f32 %v884_v38, 0.0  ;;  %v1291_v45 = vmax.f32 %v897_v40, 0.0  ;;  %v5595_v21 = vld [vmem:[%s7584_s3 + $0x1d8] sm:$0xff] }
  0x95   :  { %3410 = vmatpush.bf16.msra.mxu0 %v5539_v22  ;;  %3423 = vmatpush.bf16.msra.mxu1 %v5547_v23 }
  0x96   :  { %v1322_v52 = vpack.c.bf16 %v1290_v42, %v1290_v42  ;;  %v1323_v55 = vpack.c.bf16 %v1291_v45, %v1291_v45 }
  0x97   :  { %3436 = vmatpush.bf16.msra.mxu2 %v5555_v24  ;;  %3449 = vmatpush.bf16.msra.mxu3 %v5563_v25  ;;  %v5570_v25 = vld [vmem:[%s7584_s3 + $0x110] sm:$0xff] }
  0x99   :  { %3411 = vmatpush.bf16.msra.mxu0 %v5538_v27  ;;  %3424 = vmatpush.bf16.msra.mxu1 %v5546_v60  ;;  %v909_v54 = vpop.f32.mrf.mxu2  ;;  %v922_v57 = vpop.f32.mrf.mxu3  ;;  %v5586_v60 = vld [vmem:[%s7584_s3 + $0x190] sm:$0xff] }
  0x9a   :  { %v910_v56 = vadd.f32 %v909_v54, %v168_v46  ;;  %v885_v58 = vpop.f32.mrf.mxu0  ;;  %v923_v61 = vadd.f32 %v922_v57, %v169_v49  ;;  %v898_v62 = vpop.f32.mrf.mxu1  ;;  %v5576_v46 = vld [vmem:[%s7584_s3 + $0x140] sm:$0xff]  ;;  %v5615_v54 = vld [vmem:[%s7584_s3 + $0x278] sm:$0xff] }
  0x9b   :  { %3437 = vmatpush.bf16.msra.mxu2 %v5554_v29  ;;  %3450 = vmatpush.bf16.msra.mxu3 %v5562_v30  ;;  %v170_v29 = vperm.slane %v6734_v26, 4  ;;  %v5594_v30 = vld [vmem:[%s7584_s3 + $0x1d0] sm:$0xff] }
  0x9c   :  { %v1292_v1 = vmax.f32 %v910_v56, 0.0  ;;  %v1293_v3 = vmax.f32 %v923_v61, 0.0  ;;  %v5631_v56 = vld [vmem:[%s7584_s3 + $0x2f8] sm:$0xff] }
  0x9d   :  { %3412 = vmatpush.bf16.msra.mxu0 %v5537_v33  ;;  %3425 = vmatpush.bf16.msra.mxu1 %v5545_v34  ;;  %v172_v33 = vperm.slane %v6734_v26, 6  ;;  %v5569_v34 = vld [vmem:[%s7584_s3 + $0x108] sm:$0xff] }
  0x9e   :  { %v1324_v4 = vpack.c.bf16 %v1292_v1, %v1292_v1  ;;  %v1325_v5 = vpack.c.bf16 %v1293_v3, %v1293_v3  ;;  %v5593_v26 = vld [vmem:[%s7584_s3 + $0x1c8] sm:$0xff]  ;;  %v5622_v1 = vld [vmem:[%s7584_s3 + $0x2b0] sm:$0xff] }
  0x9f   :  { %3438 = vmatpush.bf16.msra.mxu2 %v5553_v35  ;;  %3451 = vmatpush.bf16.msra.mxu3 %v5561_v37  ;;  %v5577_v35 = vld [vmem:[%s7584_s3 + $0x148] sm:$0xff] }
  0xa1   :  { %3413 = vmatpush.bf16.msra.mxu0 %v5536_v41  ;;  %3426 = vmatpush.bf16.msra.mxu1 %v5544_v43  ;;  %v911_v10 = vpop.f32.mrf.mxu2  ;;  %v924_v11 = vpop.f32.mrf.mxu3 }
  0xa2   :  { %v935_v12 = vpop.f32.mrf.mxu0  ;;  %v948_v14 = vpop.f32.mrf.mxu1  ;;  %v5604_v10 = vld [vmem:[%s7584_s3 + $0x220] sm:$0xff] }
  0xa3   :  { %3439 = vmatpush.bf16.msra.mxu2 %v5552_v44  ;;  %3452 = vmatpush.bf16.msra.mxu3 %v5560_v47  ;;  %v936_v37 = vadd.f32 %v935_v12, %v170_v29  ;;  %v949_v40 = vadd.f32 %v948_v14, %v171_v32  ;;  %v5568_v44 = vld [vmem:[%s7584_s3 + $0x100] sm:$0xff] }
  0xa4   :  { %3414 = vmatmul.bf16.vlgmr.msra.gmra.mxu0 %v1322_v52  ;;  %3427 = vmatmul.bf16.vlgmr.msra.gmra.mxu1 %v1323_v55  ;;  %v5584_v47 = vld [vmem:[%s7584_s3 + $0x180] sm:$0xff]  ;;  %v5623_v55 = vld [vmem:[%s7584_s3 + $0x2b8] sm:$0xff] }
  0xa5   :  { %3458 = vmatpush.bf16.msrb.mxu0 %v5575_v48  ;;  %3471 = vmatpush.bf16.msrb.mxu1 %v5583_v50  ;;  %v1294_v48 = vmax.f32 %v936_v37, 0.0  ;;  %v5592_v50 = vld [vmem:[%s7584_s3 + $0x1c0] sm:$0xff]  ;;  %v1295_v52 = vmax.f32 %v949_v40, 0.0  ;;  %v5617_v37 = vld [vmem:[%s7584_s3 + $0x288] sm:$0xff] }
  0xa6   :  { %3440 = vmatmul.bf16.vlgmr.msra.gmra.mxu2 %v1324_v4  ;;  %3453 = vmatmul.bf16.vlgmr.msra.gmra.mxu3 %v1325_v5  ;;  %v5630_v4 = vld [vmem:[%s7584_s3 + $0x2f0] sm:$0xff]  ;;  %v5612_v12 = vld [vmem:[%s7584_s3 + $0x260] sm:$0xff] }
  0xa7   :  { %3484 = vmatpush.bf16.msrb.mxu2 %v5591_v51  ;;  %3497 = vmatpush.bf16.msrb.mxu3 %v5599_v53  ;;  %v5607_v51 = vld [vmem:[%s7584_s3 + $0x238] sm:$0xff]  ;;  %v1326_v57 = vpack.c.bf16 %v1294_v48, %v1294_v48  ;;  %v1327_v62 = vpack.c.bf16 %v1295_v52, %v1295_v52  ;;  %v5624_v48 = vld [vmem:[%s7584_s3 + $0x2c0] sm:$0xff] }
  0xa8   :  { %v5647_v52 = vld [vmem:[%s7584_s3 + $0x378] sm:$0xff] }
  0xa9   :  { %3459 = vmatpush.bf16.msrb.mxu0 %v5574_v59  ;;  %3472 = vmatpush.bf16.msrb.mxu1 %v5582_v63  ;;  %v961_v22 = vpop.f32.mrf.mxu2  ;;  %v974_v23 = vpop.f32.mrf.mxu3  ;;  %v5606_v59 = vld [vmem:[%s7584_s3 + $0x230] sm:$0xff] }
  0xaa   :  { %v937_v24 = vpop.f32.mrf.mxu0  ;;  %v950_v27 = vpop.f32.mrf.mxu1  ;;  %v975_v38 = vadd.f32 %v974_v23, %v173_v31  ;;  %v962_v41 = vadd.f32 %v961_v22, %v172_v33  ;;  %v6955_v22 = vld [vmem:[%s7585_s2 + $0x8] sm:$0xff]  ;;  %v5602_v23 = vld [vmem:[%s7584_s3 + $0x210] sm:$0xff] }
  0xab   :  { %3485 = vmatpush.bf16.msrb.mxu2 %v5590_v0  ;;  %3498 = vmatpush.bf16.msrb.mxu3 %v5598_v2  ;;  %v5614_v0 = vld [vmem:[%s7584_s3 + $0x270] sm:$0xff]  ;;  %v174_v29 = vperm.slane %v6955_v22, 0  ;;  %v175_v32 = vperm.slane %v6955_v22, 1  ;;  %v176_v33 = vperm.slane %v6955_v22, 2 }
  0xac   :  { %v1297_v49 = vmax.f32 %v975_v38, 0.0  ;;  %v1296_v53 = vmax.f32 %v962_v41, 0.0  ;;  %v5618_v27 = vld [vmem:[%s7584_s3 + $0x290] sm:$0xff] }
  0xad   :  { %3460 = vmatpush.bf16.msrb.mxu0 %v5573_v6  ;;  %3473 = vmatpush.bf16.msrb.mxu1 %v5581_v7  ;;  %v5605_v6 = vld [vmem:[%s7584_s3 + $0x228] sm:$0xff] }
  0xae   :  { %v1329_v58 = vpack.c.bf16 %v1297_v49, %v1297_v49  ;;  %v1328_v63 = vpack.c.bf16 %v1296_v53, %v1296_v53  ;;  %v5613_v7 = vld [vmem:[%s7584_s3 + $0x268] sm:$0xff]  ;;  %v5639_v49 = vld [vmem:[%s7584_s3 + $0x338] sm:$0xff] }
  0xaf   :  { %3486 = vmatpush.bf16.msrb.mxu2 %v5589_v8  ;;  %3499 = vmatpush.bf16.msrb.mxu3 %v5597_v9  ;;  %v5621_v8 = vld [vmem:[%s7584_s3 + $0x2a8] sm:$0xff]  ;;  %v5655_v53 = vld [vmem:[%s7584_s3 + $0x3b8] sm:$0xff] }
  0xb0   :  { %v5629_v9 = vld [vmem:[%s7584_s3 + $0x2e8] sm:$0xff] }
  0xb1   :  { %3461 = vmatpush.bf16.msrb.mxu0 %v5572_v13  ;;  %3474 = vmatpush.bf16.msrb.mxu1 %v5580_v15  ;;  %v963_v39 = vpop.f32.mrf.mxu2  ;;  %v976_v42 = vpop.f32.mrf.mxu3  ;;  %v5620_v13 = vld [vmem:[%s7584_s3 + $0x2a0] sm:$0xff] }
  0xb2   :  { %v6868_v43 = vpop.f32.mrf.mxu0  ;;  %v6873_v45 = vpop.f32.mrf.mxu1  ;;  %v5600_v42 = vld [vmem:[%s7584_s3 + $0x200] sm:$0xff] }
  0xb3   :  { %3487 = vmatpush.bf16.msrb.mxu2 %v5588_v16  ;;  %3500 = vmatpush.bf16.msrb.mxu3 %v5596_v17  ;;  %v5628_v16 = vld [vmem:[%s7584_s3 + $0x2e0] sm:$0xff]  ;;  %v988_v38 = vadd.f32 %v6868_v43, %v174_v29  ;;  %v1001_v39 = vadd.f32 %v6873_v45, %v175_v32  ;;  %v5642_v29 = vld [vmem:[%s7584_s3 + $0x350] sm:$0xff] }
  0xb4   :  { %v5608_v43 = vld [vmem:[%s7584_s3 + $0x240] sm:$0xff]  ;;  %v5658_v32 = vld [vmem:[%s7584_s3 + $0x3d0] sm:$0xff] }
  0xb5   :  { %3462 = vmatpush.bf16.msrb.mxu0 %v5571_v18  ;;  %3475 = vmatpush.bf16.msrb.mxu1 %v5579_v19  ;;  %v5603_v18 = vld [vmem:[%s7584_s3 + $0x218] sm:$0xff]  ;;  %v5616_v45 = vld [vmem:[%s7584_s3 + $0x280] sm:$0xff] }
  0xb6   :  { %v5611_v19 = vld [vmem:[%s7584_s3 + $0x258] sm:$0xff] }
  0xb7   :  { %3488 = vmatpush.bf16.msrb.mxu2 %v5587_v20  ;;  %3501 = vmatpush.bf16.msrb.mxu3 %v5595_v21  ;;  %v5619_v20 = vld [vmem:[%s7584_s3 + $0x298] sm:$0xff] }
  0xb8   :  { %v5627_v21 = vld [vmem:[%s7584_s3 + $0x2d8] sm:$0xff] }
  0xb9   :  { %3463 = vmatpush.bf16.msrb.mxu0 %v5570_v25  ;;  %3476 = vmatpush.bf16.msrb.mxu1 %v5578_v28  ;;  %v6899_v61 = vpop.f32.mrf.mxu2  ;;  %v6907_v2 = vpop.f32.mrf.mxu3  ;;  %v5610_v25 = vld [vmem:[%s7584_s3 + $0x250] sm:$0xff] }
  0xba   :  { %v989_v3 = vpop.f32.mrf.mxu0  ;;  %v1002_v5 = vpop.f32.mrf.mxu1  ;;  %v1014_v40 = vadd.f32 %v6899_v61, %v176_v33  ;;  %v179_v33 = vperm.slane %v6955_v22, 5 }
  0xbb   :  { %3489 = vmatpush.bf16.msrb.mxu2 %v5586_v60  ;;  %3502 = vmatpush.bf16.msrb.mxu3 %v5594_v30  ;;  %v5626_v30 = vld [vmem:[%s7584_s3 + $0x2d0] sm:$0xff]  ;;  %v5637_v3 = vld [vmem:[%s7584_s3 + $0x328] sm:$0xff] }
  0xbc   :  { %v5645_v5 = vld [vmem:[%s7584_s3 + $0x368] sm:$0xff] }
  0xbd   :  { %3464 = vmatpush.bf16.msrb.mxu0 %v5569_v34  ;;  %3477 = vmatpush.bf16.msrb.mxu1 %v5577_v35  ;;  %v177_v34 = vperm.slane %v6955_v22, 3  ;;  %v5601_v35 = vld [vmem:[%s7584_s3 + $0x208] sm:$0xff] }
  0xbf   :  { %3490 = vmatpush.bf16.msrb.mxu2 %v5585_v36  ;;  %3503 = vmatpush.bf16.msrb.mxu3 %v5593_v26  ;;  %v5609_v36 = vld [vmem:[%s7584_s3 + $0x248] sm:$0xff]  ;;  %v1027_v41 = vadd.f32 %v6907_v2, %v177_v34  ;;  %v5662_v2 = vld [vmem:[%s7584_s3 + $0x3f0] sm:$0xff]  ;;  %v180_v34 = vperm.slane %v6955_v22, 6 }
  0xc0   :  { %v5625_v26 = vld [vmem:[%s7584_s3 + $0x2c8] sm:$0xff] }
  0xc1   :  { %3465 = vmatpush.bf16.msrb.mxu0 %v5568_v44  ;;  %3478 = vmatpush.bf16.msrb.mxu1 %v5576_v46  ;;  %v1015_v11 = vpop.f32.mrf.mxu2  ;;  %v1028_v14 = vpop.f32.mrf.mxu3 }
  0xc2   :  { %v6933_v15 = vpop.f32.mrf.mxu0  ;;  %v6938_v17 = vpop.f32.mrf.mxu1  ;;  %v5636_v11 = vld [vmem:[%s7584_s3 + $0x320] sm:$0xff] }
  0xc3   :  { %3491 = vmatpush.bf16.msrb.mxu2 %v5584_v47  ;;  %3504 = vmatpush.bf16.msrb.mxu3 %v5592_v50  ;;  %v1298_v47 = vmax.f32 %v988_v38, 0.0  ;;  %v1299_v50 = vmax.f32 %v1001_v39, 0.0  ;;  %v5660_v14 = vld [vmem:[%s7584_s3 + $0x3e0] sm:$0xff]  ;;  %v5649_v38 = vld [vmem:[%s7584_s3 + $0x388] sm:$0xff] }
  0xc4   :  { %3466 = vmatmul.bf16.vlgmr.msrb.gmra.mxu0 %v1326_v57  ;;  %3479 = vmatmul.bf16.vlgmr.msrb.gmra.mxu1 %v1327_v62 }
  0xc5   :  { %3510 = vmatpush.bf16.msra.mxu0 %v5607_v51  ;;  %3523 = vmatpush.bf16.msra.mxu1 %v5615_v54  ;;  %v1300_v51 = vmax.f32 %v1014_v40, 0.0  ;;  %v1331_v61 = vpack.c.bf16 %v1299_v50, %v1299_v50  ;;  %v1053_v40 = vadd.f32 %v6938_v17, %v179_v33  ;;  %v5648_v17 = vld [vmem:[%s7584_s3 + $0x380] sm:$0xff]  ;;  %v5679_v50 = vld [vmem:[%s7584_s3 + $0x478] sm:$0xff]  ;;  %v5682_v33 = vld [vmem:[%s7584_s3 + $0x490] sm:$0xff] }
  0xc6   :  { %3492 = vmatmul.bf16.vlgmr.msrb.gmra.mxu2 %v1328_v63  ;;  %3505 = vmatmul.bf16.vlgmr.msrb.gmra.mxu3 %v1329_v58  ;;  %v1330_v58 = vpack.c.bf16 %v1298_v47, %v1298_v47  ;;  %v5646_v63 = vld [vmem:[%s7584_s3 + $0x370] sm:$0xff]  ;;  %v5671_v47 = vld [vmem:[%s7584_s3 + $0x438] sm:$0xff] }
  0xc7   :  { %3536 = vmatpush.bf16.msra.mxu2 %v5623_v55  ;;  %3549 = vmatpush.bf16.msra.mxu3 %v5631_v56  ;;  %v1301_v55 = vmax.f32 %v1027_v41, 0.0  ;;  %v5663_v56 = vld [vmem:[%s7584_s3 + $0x3f8] sm:$0xff]  ;;  %v1332_v62 = vpack.c.bf16 %v1300_v51, %v1300_v51 }
  0xc8   :  { %v5687_v51 = vld [vmem:[%s7584_s3 + $0x4b8] sm:$0xff] }
  0xc9   :  { %3511 = vmatpush.bf16.msra.mxu0 %v5606_v59  ;;  %3524 = vmatpush.bf16.msra.mxu1 %v5614_v0  ;;  %v6960_v24 = vpop.f32.mrf.mxu2  ;;  %v6968_v28 = vpop.f32.mrf.mxu3  ;;  %v5638_v59 = vld [vmem:[%s7584_s3 + $0x330] sm:$0xff] }
  0xca   :  { %v1041_v60 = vpop.f32.mrf.mxu0  ;;  %v1054_v31 = vpop.f32.mrf.mxu1  ;;  %v5654_v0 = vld [vmem:[%s7584_s3 + $0x3b0] sm:$0xff]  ;;  %v1066_v41 = vadd.f32 %v6960_v24, %v180_v34 }
  0xcb   :  { %3537 = vmatpush.bf16.msra.mxu2 %v5622_v1  ;;  %3550 = vmatpush.bf16.msra.mxu3 %v5630_v4  ;;  %v1333_v1 = vpack.c.bf16 %v1301_v55, %v1301_v55  ;;  %v178_v31 = vperm.slane %v6955_v22, 4 }
  0xcd   :  { %3512 = vmatpush.bf16.msra.mxu0 %v5605_v6  ;;  %3525 = vmatpush.bf16.msra.mxu1 %v5613_v7  ;;  %v5653_v6 = vld [vmem:[%s7584_s3 + $0x3a8] sm:$0xff] }
  0xcf   :  { %3538 = vmatpush.bf16.msra.mxu2 %v5621_v8  ;;  %3551 = vmatpush.bf16.msra.mxu3 %v5629_v9  ;;  %v5661_v9 = vld [vmem:[%s7584_s3 + $0x3e8] sm:$0xff] }
  0xd1   :  { %3513 = vmatpush.bf16.msra.mxu0 %v5604_v10  ;;  %3526 = vmatpush.bf16.msra.mxu1 %v5612_v12  ;;  %v1067_v44 = vpop.f32.mrf.mxu2  ;;  %v1080_v46 = vpop.f32.mrf.mxu3  ;;  %v5644_v12 = vld [vmem:[%s7584_s3 + $0x360] sm:$0xff] }
  0xd2   :  { %v7014_v54 = vpop.f32.mrf.mxu0  ;;  %v7019_v57 = vpop.f32.mrf.mxu1  ;;  %v5640_v46 = vld [vmem:[%s7584_s3 + $0x340] sm:$0xff] }
  0xd3   :  { %3539 = vmatpush.bf16.msra.mxu2 %v5620_v13  ;;  %3552 = vmatpush.bf16.msra.mxu3 %v5628_v16  ;;  %v5652_v13 = vld [vmem:[%s7584_s3 + $0x3a0] sm:$0xff]  ;;  %v5635_v16 = vld [vmem:[%s7584_s3 + $0x318] sm:$0xff] }
  0xd5   :  { %3514 = vmatpush.bf16.msra.mxu0 %v5603_v18  ;;  %3527 = vmatpush.bf16.msra.mxu1 %v5611_v19  ;;  %v5643_v19 = vld [vmem:[%s7584_s3 + $0x358] sm:$0xff] }
  0xd7   :  { %3540 = vmatpush.bf16.msra.mxu2 %v5619_v20  ;;  %3553 = vmatpush.bf16.msra.mxu3 %v5627_v21  ;;  %v5651_v20 = vld [vmem:[%s7584_s3 + $0x398] sm:$0xff] }
  0xd9   :  { %3515 = vmatpush.bf16.msra.mxu0 %v5602_v23  ;;  %3528 = vmatpush.bf16.msra.mxu1 %v5610_v25  ;;  %v7036_v4 = vpop.f32.mrf.mxu2  ;;  %v7044_v7 = vpop.f32.mrf.mxu3  ;;  %v5659_v23 = vld [vmem:[%s7584_s3 + $0x3d8] sm:$0xff] }
  0xda   :  { %v1093_v8 = vpop.f32.mrf.mxu0  ;;  %v1106_v10 = vpop.f32.mrf.mxu1 }
  0xdb   :  { %3541 = vmatpush.bf16.msra.mxu2 %v5618_v27  ;;  %3554 = vmatpush.bf16.msra.mxu3 %v5626_v30  ;;  %v5634_v27 = vld [vmem:[%s7584_s3 + $0x310] sm:$0xff]  ;;  %v5677_v8 = vld [vmem:[%s7584_s3 + $0x468] sm:$0xff] }
  0xdc   :  { %v5650_v30 = vld [vmem:[%s7584_s3 + $0x390] sm:$0xff]  ;;  %v5693_v10 = vld [vmem:[%s7584_s3 + $0x4e8] sm:$0xff] }
  0xdd   :  { %3516 = vmatpush.bf16.msra.mxu0 %v5601_v35  ;;  %3529 = vmatpush.bf16.msra.mxu1 %v5609_v36  ;;  %v181_v35 = vperm.slane %v6955_v22, 7  ;;  %v5633_v36 = vld [vmem:[%s7584_s3 + $0x308] sm:$0xff] }
  0xde   :  { %v5657_v22 = vld [vmem:[%s7584_s3 + $0x3c8] sm:$0xff] }
  0xdf   :  { %3542 = vmatpush.bf16.msra.mxu2 %v5617_v37  ;;  %3555 = vmatpush.bf16.msra.mxu3 %v5625_v26  ;;  %v5641_v37 = vld [vmem:[%s7584_s3 + $0x348] sm:$0xff]  ;;  %v1040_v26 = vadd.f32 %v6933_v15, %v178_v31  ;;  %v5632_v15 = vld [vmem:[%s7584_s3 + $0x300] sm:$0xff]  ;;  %v5666_v31 = vld [vmem:[%s7584_s3 + $0x410] sm:$0xff] }
  0xe1   :  { %3517 = vmatpush.bf16.msra.mxu0 %v5600_v42  ;;  %3530 = vmatpush.bf16.msra.mxu1 %v5608_v43  ;;  %v1119_v18 = vpop.f32.mrf.mxu2  ;;  %v1132_v21 = vpop.f32.mrf.mxu3  ;;  %v1079_v43 = vadd.f32 %v6968_v28, %v181_v35  ;;  %v1302_v24 = vmax.f32 %v1040_v26, 0.0  ;;  %v5656_v28 = vld [vmem:[%s7584_s3 + $0x3c0] sm:$0xff]  ;;  %v5690_v35 = vld [vmem:[%s7584_s3 + $0x4d0] sm:$0xff] }
  0xe2   :  { %v7073_v25 = vpop.f32.mrf.mxu0  ;;  %v7078_v60 = vpop.f32.mrf.mxu1 }
  0xe3   :  { %3543 = vmatpush.bf16.msra.mxu2 %v5616_v45  ;;  %3556 = vmatpush.bf16.msra.mxu3 %v5624_v48  ;;  %v1303_v48 = vmax.f32 %v1053_v40, 0.0  ;;  %v1334_v55 = vpack.c.bf16 %v1302_v24, %v1302_v24 }
  0xe4   :  { %3518 = vmatmul.bf16.vlgmr.msra.gmra.mxu0 %v1330_v58  ;;  %3531 = vmatmul.bf16.vlgmr.msra.gmra.mxu1 %v1331_v61 }
  0xe5   :  { %3562 = vmatpush.bf16.msrb.mxu0 %v5639_v49  ;;  %3575 = vmatpush.bf16.msrb.mxu1 %v5647_v52  ;;  %v1304_v49 = vmax.f32 %v1066_v41, 0.0  ;;  %v1305_v52 = vmax.f32 %v1079_v43, 0.0  ;;  %v5665_v41 = vld [vmem:[%s7584_s3 + $0x408] sm:$0xff] }
  0xe6   :  { %3544 = vmatmul.bf16.vlgmr.msra.gmra.mxu2 %v1332_v62  ;;  %3557 = vmatmul.bf16.vlgmr.msra.gmra.mxu3 %v1333_v1  ;;  %v5678_v62 = vld [vmem:[%s7584_s3 + $0x470] sm:$0xff]  ;;  %v5673_v43 = vld [vmem:[%s7584_s3 + $0x448] sm:$0xff] }
  0xe7   :  { %3588 = vmatpush.bf16.msrb.mxu2 %v5655_v53  ;;  %3601 = vmatpush.bf16.msrb.mxu3 %v5663_v56  ;;  %v5695_v53 = vld [vmem:[%s7584_s3 + $0x4f8] sm:$0xff]  ;;  %v5670_v56 = vld [vmem:[%s7584_s3 + $0x430] sm:$0xff]  ;;  %v1336_v61 = vpack.c.bf16 %v1304_v49, %v1304_v49  ;;  %v1337_v1 = vpack.c.bf16 %v1305_v52, %v1305_v52 }
  0xe8   :  { %v5711_v52 = vld [vmem:[%s7584_s3 + $0x578] sm:$0xff] }
  0xe9   :  { %3563 = vmatpush.bf16.msrb.mxu0 %v5638_v59  ;;  %3576 = vmatpush.bf16.msrb.mxu1 %v5646_v63  ;;  %v7106_v39 = vpop.f32.mrf.mxu2  ;;  %v7110_v42 = vpop.f32.mrf.mxu3  ;;  %v1335_v59 = vpack.c.bf16 %v1303_v48, %v1303_v48  ;;  %v5686_v63 = vld [vmem:[%s7584_s3 + $0x4b0] sm:$0xff]  ;;  %v5680_v48 = vld [vmem:[%s7584_s3 + $0x480] sm:$0xff] }
  0xea   :  { %v1145_v44 = vpop.f32.mrf.mxu0  ;;  %v1158_v45 = vpop.f32.mrf.mxu1 }
  0xeb   :  { %3589 = vmatpush.bf16.msrb.mxu2 %v5654_v0  ;;  %3602 = vmatpush.bf16.msrb.mxu3 %v5662_v2  ;;  %v5694_v2 = vld [vmem:[%s7584_s3 + $0x4f0] sm:$0xff] }
  0xed   :  { %3564 = vmatpush.bf16.msrb.mxu0 %v5637_v3  ;;  %3577 = vmatpush.bf16.msrb.mxu1 %v5645_v5  ;;  %v5669_v5 = vld [vmem:[%s7584_s3 + $0x428] sm:$0xff] }
  0xef   :  { %3590 = vmatpush.bf16.msrb.mxu2 %v5653_v6  ;;  %3603 = vmatpush.bf16.msrb.mxu3 %v5661_v9  ;;  %v5685_v9 = vld [vmem:[%s7584_s3 + $0x4a8] sm:$0xff] }
  0xf1   :  { %3565 = vmatpush.bf16.msrb.mxu0 %v5636_v11  ;;  %3578 = vmatpush.bf16.msrb.mxu1 %v5644_v12  ;;  %v1171_v58 = vpop.f32.mrf.mxu2  ;;  %v1184_v0 = vpop.f32.mrf.mxu3  ;;  %v5668_v11 = vld [vmem:[%s7584_s3 + $0x420] sm:$0xff] }
  0xf2   :  { %v7149_v3 = vpop.f32.mrf.mxu0  ;;  %v7154_v6 = vpop.f32.mrf.mxu1  ;;  %v5676_v12 = vld [vmem:[%s7584_s3 + $0x460] sm:$0xff] }
  0xf3   :  { %3591 = vmatpush.bf16.msrb.mxu2 %v5652_v13  ;;  %3604 = vmatpush.bf16.msrb.mxu3 %v5660_v14  ;;  %v5684_v13 = vld [vmem:[%s7584_s3 + $0x4a0] sm:$0xff] }
  0xf4   :  { %v5692_v14 = vld [vmem:[%s7584_s3 + $0x4e0] sm:$0xff] }
  0xf5   :  { %3566 = vmatpush.bf16.msrb.mxu0 %v5635_v16  ;;  %3579 = vmatpush.bf16.msrb.mxu1 %v5643_v19 }
  0xf7   :  { %3592 = vmatpush.bf16.msrb.mxu2 %v5651_v20  ;;  %3605 = vmatpush.bf16.msrb.mxu3 %v5659_v23  ;;  %v5667_v20 = vld [vmem:[%s7584_s3 + $0x418] sm:$0xff] }
  0xf8   :  { %v5675_v23 = vld [vmem:[%s7584_s3 + $0x458] sm:$0xff] }
  0xf9   :  { %3567 = vmatpush.bf16.msrb.mxu0 %v5634_v27  ;;  %3580 = vmatpush.bf16.msrb.mxu1 %v5642_v29  ;;  %v7177_v16 = vpop.f32.mrf.mxu2  ;;  %v7179_v18 = vpop.f32.mrf.mxu3  ;;  %v5683_v27 = vld [vmem:[%s7584_s3 + $0x498] sm:$0xff] }
  0xfa   :  { %v1197_v19 = vpop.f32.mrf.mxu0  ;;  %v1210_v21 = vpop.f32.mrf.mxu1  ;;  %v5691_v29 = vld [vmem:[%s7584_s3 + $0x4d8] sm:$0xff] }
  0xfb   :  { %3593 = vmatpush.bf16.msrb.mxu2 %v5650_v30  ;;  %3606 = vmatpush.bf16.msrb.mxu3 %v5658_v32  ;;  %v7196_v30 = vld [vmem:[%s7585_s2 + $0x10] sm:$0xff] }
  0xfc   :  { %v5674_v32 = vld [vmem:[%s7584_s3 + $0x450] sm:$0xff]  ;;  %v182_v34 = vperm.slane %v7196_v30, 0  ;;  %v185_v40 = vperm.slane %v7196_v30, 3 }
  0xfd   :  { %3568 = vmatpush.bf16.msrb.mxu0 %v5633_v36  ;;  %3581 = vmatpush.bf16.msrb.mxu1 %v5641_v37  ;;  %v183_v37 = vperm.slane %v7196_v30, 1 }
  0xfe   :  { %v1092_v45 = vadd.f32 %v7014_v54, %v182_v34  ;;  %v5672_v54 = vld [vmem:[%s7584_s3 + $0x440] sm:$0xff] }
  0xff   :  { %3594 = vmatpush.bf16.msrb.mxu2 %v5649_v38  ;;  %3607 = vmatpush.bf16.msrb.mxu3 %v5657_v22  ;;  %v184_v38 = vperm.slane %v7196_v30, 2 }
 0x101   :  { %3569 = vmatpush.bf16.msrb.mxu0 %v5632_v15  ;;  %3582 = vmatpush.bf16.msrb.mxu1 %v5640_v46  ;;  %v1223_v36 = vpop.f32.mrf.mxu2  ;;  %v1236_v26 = vpop.f32.mrf.mxu3  ;;  %v5681_v15 = vld [vmem:[%s7584_s3 + $0x488] sm:$0xff]  ;;  %v1118_v24 = vadd.f32 %v7036_v4, %v184_v38  ;;  %v5688_v4 = vld [vmem:[%s7584_s3 + $0x4c0] sm:$0xff]  ;;  %v5723_v38 = vld [vmem:[%s7584_s3 + $0x5d8] sm:$0xff] }
 0x102   :  { %v7213_v22 = vpop.f32.mrf.mxu0  ;;  %v7219_v44 = vpop.f32.mrf.mxu1  ;;  %v5689_v46 = vld [vmem:[%s7584_s3 + $0x4c8] sm:$0xff]  ;;  %v5707_v36 = vld [vmem:[%s7584_s3 + $0x558] sm:$0xff] }
 0x103   :  { %3595 = vmatpush.bf16.msrb.mxu2 %v5648_v17  ;;  %3608 = vmatpush.bf16.msrb.mxu3 %v5656_v28  ;;  %v1105_v17 = vadd.f32 %v7019_v57, %v183_v37  ;;  %v1131_v28 = vadd.f32 %v7044_v7, %v185_v40  ;;  %v1306_v57 = vmax.f32 %v1092_v45, 0.0  ;;  %v5703_v7 = vld [vmem:[%s7584_s3 + $0x538] sm:$0xff]  ;;  %v5698_v40 = vld [vmem:[%s7584_s3 + $0x510] sm:$0xff] }
 0x104   :  { %3570 = vmatmul.bf16.vlgmr.msrb.gmra.mxu0 %v1334_v55  ;;  %3583 = vmatmul.bf16.vlgmr.msrb.gmra.mxu1 %v1335_v59  ;;  %v5727_v59 = vld [vmem:[%s7584_s3 + $0x5f8] sm:$0xff] }
 0x105   :  { %3614 = vmatpush.bf16.msra.mxu0 %v5671_v47  ;;  %3627 = vmatpush.bf16.msra.mxu1 %v5679_v50  ;;  %v5664_v47 = vld [vmem:[%s7584_s3 + $0x400] sm:$0xff]  ;;  %v1307_v50 = vmax.f32 %v1105_v17, 0.0  ;;  %v1309_v58 = vmax.f32 %v1131_v28, 0.0  ;;  %v5715_v37 = vld [vmem:[%s7584_s3 + $0x598] sm:$0xff]  ;;  %v5722_v17 = vld [vmem:[%s7584_s3 + $0x5d0] sm:$0xff] }
 0x106   :  { %3596 = vmatmul.bf16.vlgmr.msrb.gmra.mxu2 %v1336_v61  ;;  %3609 = vmatmul.bf16.vlgmr.msrb.gmra.mxu3 %v1337_v1 }
 0x107   :  { %3640 = vmatpush.bf16.msra.mxu2 %v5687_v51  ;;  %3653 = vmatpush.bf16.msra.mxu3 %v5695_v53  ;;  %v1308_v51 = vmax.f32 %v1118_v24, 0.0  ;;  %v5719_v53 = vld [vmem:[%s7584_s3 + $0x5b8] sm:$0xff]  ;;  %v1339_v0 = vpack.c.bf16 %v1307_v50, %v1307_v50  ;;  %v5713_v50 = vld [vmem:[%s7584_s3 + $0x588] sm:$0xff] }
 0x109   :  { %3615 = vmatpush.bf16.msra.mxu0 %v5670_v56  ;;  %3628 = vmatpush.bf16.msra.mxu1 %v5678_v62  ;;  %v7249_v49 = vpop.f32.mrf.mxu2  ;;  %v7257_v56 = vpop.f32.mrf.mxu3  ;;  %v1338_v62 = vpack.c.bf16 %v1306_v57, %v1306_v57  ;;  %v1340_v1 = vpack.c.bf16 %v1308_v51, %v1308_v51  ;;  %v5697_v57 = vld [vmem:[%s7584_s3 + $0x508] sm:$0xff] }
 0x10a   :  { %v1249_v55 = vpop.f32.mrf.mxu0  ;;  %v1262_v61 = vpop.f32.mrf.mxu1 }
 0x10b   :  { %3641 = vmatpush.bf16.msra.mxu2 %v5686_v63  ;;  %3654 = vmatpush.bf16.msra.mxu3 %v5694_v2  ;;  %v5702_v63 = vld [vmem:[%s7584_s3 + $0x530] sm:$0xff] }
 0x10c   :  { %v5710_v2 = vld [vmem:[%s7584_s3 + $0x570] sm:$0xff] }
 0x10d   :  { %3616 = vmatpush.bf16.msra.mxu0 %v5669_v5  ;;  %3629 = vmatpush.bf16.msra.mxu1 %v5677_v8  ;;  %v5718_v5 = vld [vmem:[%s7584_s3 + $0x5b0] sm:$0xff]  ;;  %v1341_v8 = vpack.c.bf16 %v1309_v58, %v1309_v58  ;;  %v5696_v58 = vld [vmem:[%s7584_s3 + $0x500] sm:$0xff] }
 0x10f   :  { %3642 = vmatpush.bf16.msra.mxu2 %v5685_v9  ;;  %3655 = vmatpush.bf16.msra.mxu3 %v5693_v10  ;;  %v5726_v9 = vld [vmem:[%s7584_s3 + $0x5f0] sm:$0xff]  ;;  %v5701_v10 = vld [vmem:[%s7584_s3 + $0x528] sm:$0xff] }
 0x111   :  { %3617 = vmatpush.bf16.msra.mxu0 %v5668_v11  ;;  %3630 = vmatpush.bf16.msra.mxu1 %v5676_v12  ;;  %v1275_v11 = vpop.f32.mrf.mxu2  ;;  %v5792_v12 = vld [vmem:[%s7586_s4] ss:$0 sm:$0xff]  ;;  %v1288_v19 = vpop.f32.mrf.mxu3 }
 0x113   :  { %3643 = vmatpush.bf16.msra.mxu2 %v5684_v13  ;;  %3656 = vmatpush.bf16.msra.mxu3 %v5692_v14  ;;  %v5709_v13 = vld [vmem:[%s7584_s3 + $0x568] sm:$0xff] }
 0x114   :  { %v5717_v14 = vld [vmem:[%s7584_s3 + $0x5a8] sm:$0xff] }
 0x115   :  { %3618 = vmatpush.bf16.msra.mxu0 %v5667_v20  ;;  %3631 = vmatpush.bf16.msra.mxu1 %v5675_v23  ;;  %v5725_v20 = vld [vmem:[%s7584_s3 + $0x5e8] sm:$0xff]  ;;  %v5700_v23 = vld [vmem:[%s7584_s3 + $0x520] sm:$0xff] }
 0x117   :  { %3644 = vmatpush.bf16.msra.mxu2 %v5683_v27  ;;  %3657 = vmatpush.bf16.msra.mxu3 %v5691_v29 }
 0x119   :  { %3619 = vmatpush.bf16.msra.mxu0 %v5666_v31  ;;  %3632 = vmatpush.bf16.msra.mxu1 %v5674_v32  ;;  %v5708_v31 = vld [vmem:[%s7584_s3 + $0x560] sm:$0xff] }
 0x11a   :  { %v5716_v32 = vld [vmem:[%s7584_s3 + $0x5a0] sm:$0xff] }
 0x11b   :  { %3645 = vmatpush.bf16.msra.mxu2 %v5682_v33  ;;  %3658 = vmatpush.bf16.msra.mxu3 %v5690_v35  ;;  %v5724_v33 = vld [vmem:[%s7584_s3 + $0x5e0] sm:$0xff]  ;;  %v5699_v35 = vld [vmem:[%s7584_s3 + $0x518] sm:$0xff] }
 0x11d   :  { %3620 = vmatpush.bf16.msra.mxu0 %v5665_v41  ;;  %3633 = vmatpush.bf16.msra.mxu1 %v5673_v43  ;;  %v5706_v43 = vld [vmem:[%s7584_s3 + $0x550] sm:$0xff] }
 0x11f   :  { %3646 = vmatpush.bf16.msra.mxu2 %v5681_v15  ;;  %3659 = vmatpush.bf16.msra.mxu3 %v5689_v46  ;;  %v5714_v15 = vld [vmem:[%s7584_s3 + $0x590] sm:$0xff]  ;;  %v186_v46 = vperm.slane %v7196_v30, 4 }
 0x121   :  { %3621 = vmatpush.bf16.msra.mxu0 %v5664_v47  ;;  %3634 = vmatpush.bf16.msra.mxu1 %v5672_v54  ;;  %v3415_v21 = vpop.f32.mrf.mxu0  ;;  %v3428_v29 = vpop.f32.mrf.mxu1  ;;  %v187_v47 = vperm.slane %v7196_v30, 5  ;;  %v188_v54 = vperm.slane %v7196_v30, 6  ;;  %v1144_v51 = vadd.f32 %v7073_v25, %v186_v46  ;;  %v5704_v25 = vld [vmem:[%s7584_s3 + $0x540] sm:$0xff] }
 0x122   :  { %v3416_v27 = vadd.f32 %v5792_v12, %v3415_v21  ;;  %v5733_v21 = vld [vmem:[%s7584_s3 + $0x628] sm:$0xff] }
 0x123   :  { %3647 = vmatpush.bf16.msra.mxu2 %v5680_v48  ;;  %3660 = vmatpush.bf16.msra.mxu3 %v5688_v4  ;;  %v189_v48 = vperm.slane %v7196_v30, 7  ;;  %v5721_v30 = vld [vmem:[%s7584_s3 + $0x5c8] sm:$0xff]  ;;  %v1310_v61 = vmax.f32 %v1144_v51, 0.0 }
 0x124   :  { %3622 = vmatmul.bf16.vlgmr.msra.gmra.mxu0 %v1338_v62  ;;  %3635 = vmatmul.bf16.vlgmr.msra.gmra.mxu1 %v1339_v0  ;;  %v3429_v34 = vadd.f32 %v3428_v29, %v3416_v27  ;;  %v5749_v27 = vld [vmem:[%s7584_s3 + $0x6a8] sm:$0xff] }
 0x125   :  { %3666 = vmatpush.bf16.msrb.mxu0 %v5703_v7  ;;  %3679 = vmatpush.bf16.msrb.mxu1 %v5711_v52  ;;  %v5705_v7 = vld [vmem:[%s7584_s3 + $0x548] sm:$0xff]  ;;  %v1157_v52 = vadd.f32 %v7078_v60, %v187_v47  ;;  %v1183_v55 = vadd.f32 %v7110_v42, %v189_v48  ;;  %v5735_v42 = vld [vmem:[%s7584_s3 + $0x638] sm:$0xff]  ;;  %v5730_v47 = vld [vmem:[%s7584_s3 + $0x610] sm:$0xff] }
 0x126   :  { %3648 = vmatmul.bf16.vlgmr.msra.gmra.mxu2 %v1340_v1  ;;  %3661 = vmatmul.bf16.vlgmr.msra.gmra.mxu3 %v1341_v8  ;;  %v5743_v1 = vld [vmem:[%s7584_s3 + $0x678] sm:$0xff]  ;;  %v5757_v29 = vld [vmem:[%s7584_s3 + $0x6e8] sm:$0xff]  ;;  %v5738_v48 = vld [vmem:[%s7584_s3 + $0x650] sm:$0xff] }
 0x127   :  { %3692 = vmatpush.bf16.msrb.mxu2 %v5719_v53  ;;  %3705 = vmatpush.bf16.msrb.mxu3 %v5727_v59  ;;  %v1170_v53 = vadd.f32 %v7106_v39, %v188_v54  ;;  %v5712_v59 = vld [vmem:[%s7584_s3 + $0x580] sm:$0xff]  ;;  %v5759_v8 = vld [vmem:[%s7584_s3 + $0x6f8] sm:$0xff] }
 0x128   :  { %v5720_v39 = vld [vmem:[%s7584_s3 + $0x5c0] sm:$0xff] }
 0x129   :  { %3667 = vmatpush.bf16.msrb.mxu0 %v5702_v63  ;;  %3680 = vmatpush.bf16.msrb.mxu1 %v5710_v2  ;;  %v3417_v26 = vpop.f32.mrf.mxu0  ;;  %v3430_v41 = vpop.f32.mrf.mxu1  ;;  %v1311_v63 = vmax.f32 %v1157_v52, 0.0  ;;  %v1312_v0 = vmax.f32 %v1170_v53, 0.0  ;;  %v5751_v2 = vld [vmem:[%s7584_s3 + $0x6b8] sm:$0xff]  ;;  %v5729_v52 = vld [vmem:[%s7584_s3 + $0x608] sm:$0xff] }
 0x12a   :  { %v3441_v45 = vpop.f32.mrf.mxu2  ;;  %v3454_v28 = vpop.f32.mrf.mxu3  ;;  %v5731_v26 = vld [vmem:[%s7584_s3 + $0x618] sm:$0xff]  ;;  %v5737_v53 = vld [vmem:[%s7584_s3 + $0x648] sm:$0xff] }
 0x12b   :  { %3693 = vmatpush.bf16.msrb.mxu2 %v5718_v5  ;;  %3706 = vmatpush.bf16.msrb.mxu3 %v5726_v9  ;;  %v3442_v24 = vadd.f32 %v3441_v45, %v3429_v34  ;;  %v1313_v5 = vmax.f32 %v1183_v55, 0.0  ;;  %v1342_v9 = vpack.c.bf16 %v1310_v61, %v1310_v61  ;;  %v1343_v11 = vpack.c.bf16 %v1311_v63, %v1311_v63  ;;  %v5732_v34 = vld [vmem:[%s7584_s3 + $0x620] sm:$0xff]  ;;  %v5747_v41 = vld [vmem:[%s7584_s3 + $0x698] sm:$0xff]  ;;  %v5745_v55 = vld [vmem:[%s7584_s3 + $0x688] sm:$0xff] }
 0x12c   :  { %v1344_v12 = vpack.c.bf16 %v1312_v0, %v1312_v0  ;;  %v7420_v45 = vld [vmem:[%s7585_s2 + $0x18] sm:$0xff] }
 0x12d   :  { %3668 = vmatpush.bf16.msrb.mxu0 %v5701_v10  ;;  %3681 = vmatpush.bf16.msrb.mxu1 %v5709_v13  ;;  %v3455_v4 = vadd.f32 %v3454_v28, %v3442_v24  ;;  %v5734_v10 = vld [vmem:[%s7584_s3 + $0x630] sm:$0xff]  ;;  %v1345_v19 = vpack.c.bf16 %v1313_v5, %v1313_v5  ;;  %v192_v51 = vperm.slane %v7420_v45, 2  ;;  %v5783_v5 = vld [vmem:[%s7584_s3 + $0x7b8] sm:$0xff] }
 0x12e   :  { %v5742_v13 = vld [vmem:[%s7584_s3 + $0x670] sm:$0xff] }
 0x12f   :  { %3694 = vmatpush.bf16.msrb.mxu2 %v5717_v14  ;;  %3707 = vmatpush.bf16.msrb.mxu3 %v5725_v20  ;;  %v5750_v14 = vld [vmem:[%s7584_s3 + $0x6b0] sm:$0xff]  ;;  %v1222_v61 = vadd.f32 %v7177_v16, %v192_v51  ;;  %v5752_v16 = vld [vmem:[%s7584_s3 + $0x6c0] sm:$0xff]  ;;  %v196_v51 = vperm.slane %v7420_v45, 6 }
 0x130   :  { %v5758_v20 = vld [vmem:[%s7584_s3 + $0x6f0] sm:$0xff] }
 0x131   :  { %3669 = vmatpush.bf16.msrb.mxu0 %v5700_v23  ;;  %3682 = vmatpush.bf16.msrb.mxu1 %v5708_v31  ;;  %v5741_v23 = vld [vmem:[%s7584_s3 + $0x668] sm:$0xff] }
 0x132   :  { %v3443_v60 = vpop.f32.mrf.mxu2  ;;  %v3456_v62 = vpop.f32.mrf.mxu3 }
 0x133   :  { %3695 = vmatpush.bf16.msrb.mxu2 %v5716_v32  ;;  %3708 = vmatpush.bf16.msrb.mxu3 %v5724_v33  ;;  %v5728_v62 = vld [vmem:[%s7584_s3 + $0x600] sm:$0xff] }
 0x135   :  { %3670 = vmatpush.bf16.msrb.mxu0 %v5699_v35  ;;  %3683 = vmatpush.bf16.msrb.mxu1 %v5707_v36  ;;  %v5740_v35 = vld [vmem:[%s7584_s3 + $0x660] sm:$0xff] }
 0x136   :  { %v5748_v36 = vld [vmem:[%s7584_s3 + $0x6a0] sm:$0xff] }
 0x137   :  { %3696 = vmatpush.bf16.msrb.mxu2 %v5715_v37  ;;  %3709 = vmatpush.bf16.msrb.mxu3 %v5723_v38  ;;  %v5756_v38 = vld [vmem:[%s7584_s3 + $0x6e0] sm:$0xff] }
 0x139   :  { %3671 = vmatpush.bf16.msrb.mxu0 %v5698_v40  ;;  %3684 = vmatpush.bf16.msrb.mxu1 %v5706_v43  ;;  %v5739_v40 = vld [vmem:[%s7584_s3 + $0x658] sm:$0xff] }
 0x13a   :  { %v5755_v43 = vld [vmem:[%s7584_s3 + $0x6d8] sm:$0xff] }
 0x13b   :  { %3697 = vmatpush.bf16.msrb.mxu2 %v5714_v15  ;;  %3710 = vmatpush.bf16.msrb.mxu3 %v5722_v17 }
 0x13d   :  { %3672 = vmatpush.bf16.msrb.mxu0 %v5697_v57  ;;  %3685 = vmatpush.bf16.msrb.mxu1 %v5705_v7  ;;  %v5746_v57 = vld [vmem:[%s7584_s3 + $0x690] sm:$0xff] }
 0x13e   :  { %v5754_v7 = vld [vmem:[%s7584_s3 + $0x6d0] sm:$0xff] }
 0x13f   :  { %3698 = vmatpush.bf16.msrb.mxu2 %v5713_v50  ;;  %3711 = vmatpush.bf16.msrb.mxu3 %v5721_v30  ;;  %v191_v50 = vperm.slane %v7420_v45, 1  ;;  %v193_v30 = vperm.slane %v7420_v45, 3 }
 0x141   :  { %3673 = vmatpush.bf16.msrb.mxu0 %v5696_v58  ;;  %3686 = vmatpush.bf16.msrb.mxu1 %v5704_v25  ;;  %v3467_v31 = vpop.f32.mrf.mxu0  ;;  %v3480_v33 = vpop.f32.mrf.mxu1  ;;  %v5753_v25 = vld [vmem:[%s7584_s3 + $0x6c8] sm:$0xff]  ;;  %v1209_v60 = vadd.f32 %v7154_v6, %v191_v50  ;;  %v5744_v6 = vld [vmem:[%s7584_s3 + $0x680] sm:$0xff]  ;;  %v195_v50 = vperm.slane %v7420_v45, 5 }
 0x142   :  { %v3468_v32 = vadd.f32 %v3467_v31, %v3455_v4  ;;  %v190_v4 = vperm.slane %v7420_v45, 0  ;;  %v5789_v31 = vld [vmem:[%s7584_s3 + $0x7e8] sm:$0xff] }
 0x143   :  { %3699 = vmatpush.bf16.msrb.mxu2 %v5712_v59  ;;  %3712 = vmatpush.bf16.msrb.mxu3 %v5720_v39  ;;  %v1315_v0 = vmax.f32 %v1209_v60, 0.0  ;;  %v5785_v60 = vld [vmem:[%s7584_s3 + $0x7c8] sm:$0xff] }
 0x144   :  { %3674 = vmatmul.bf16.vlgmr.msrb.gmra.mxu0 %v1342_v9  ;;  %3687 = vmatmul.bf16.vlgmr.msrb.gmra.mxu1 %v1343_v11  ;;  %v3481_v37 = vadd.f32 %v3480_v33, %v3468_v32  ;;  %v1196_v58 = vadd.f32 %v7149_v3, %v190_v4  ;;  %v5736_v3 = vld [vmem:[%s7584_s3 + $0x640] sm:$0xff]  ;;  %v5791_v9 = vld [vmem:[%s7584_s3 + $0x7f8] sm:$0xff]  ;;  %v5766_v11 = vld [vmem:[%s7584_s3 + $0x730] sm:$0xff] }
 0x145   :  { %3718 = vmatpush.bf16.msra.mxu0 %v5735_v42  ;;  %3731 = vmatpush.bf16.msra.mxu1 %v5743_v1  ;;  %v1235_v42 = vadd.f32 %v7179_v18, %v193_v30  ;;  %v5767_v18 = vld [vmem:[%s7584_s3 + $0x738] sm:$0xff]  ;;  %v1316_v1 = vmax.f32 %v1222_v61, 0.0  ;;  %v5770_v4 = vld [vmem:[%s7584_s3 + $0x750] sm:$0xff] }
 0x146   :  { %3700 = vmatmul.bf16.vlgmr.msrb.gmra.mxu2 %v1344_v12  ;;  %3713 = vmatmul.bf16.vlgmr.msrb.gmra.mxu3 %v1345_v19  ;;  %v1314_v63 = vmax.f32 %v1196_v58, 0.0  ;;  %v1347_v12 = vpack.c.bf16 %v1315_v0, %v1315_v0  ;;  %v5782_v19 = vld [vmem:[%s7584_s3 + $0x7b0] sm:$0xff]  ;;  %v5769_v58 = vld [vmem:[%s7584_s3 + $0x748] sm:$0xff] }
 0x147   :  { %3744 = vmatpush.bf16.msra.mxu2 %v5751_v2  ;;  %3757 = vmatpush.bf16.msra.mxu3 %v5759_v8  ;;  %v5775_v2 = vld [vmem:[%s7584_s3 + $0x778] sm:$0xff]  ;;  %v1317_v8 = vmax.f32 %v1235_v42, 0.0  ;;  %v5786_v30 = vld [vmem:[%s7584_s3 + $0x7d0] sm:$0xff]  ;;  %v5760_v42 = vld [vmem:[%s7584_s3 + $0x700] sm:$0xff] }
 0x149   :  { %3719 = vmatpush.bf16.msra.mxu0 %v5734_v10  ;;  %3732 = vmatpush.bf16.msra.mxu1 %v5742_v13  ;;  %v3493_v15 = vpop.f32.mrf.mxu2  ;;  %v3506_v17 = vpop.f32.mrf.mxu3  ;;  %v1346_v10 = vpack.c.bf16 %v1314_v63, %v1314_v63  ;;  %v1348_v13 = vpack.c.bf16 %v1316_v1, %v1316_v1 }
 0x14a   :  { %v3494_v46 = vadd.f32 %v3493_v15, %v3481_v37  ;;  %v3469_v24 = vpop.f32.mrf.mxu0  ;;  %v3482_v28 = vpop.f32.mrf.mxu1  ;;  %v5780_v37 = vld [vmem:[%s7584_s3 + $0x7a0] sm:$0xff]  ;;  %v5787_v15 = vld [vmem:[%s7584_s3 + $0x7d8] sm:$0xff] }
 0x14b   :  { %3745 = vmatpush.bf16.msra.mxu2 %v5750_v14  ;;  %3758 = vmatpush.bf16.msra.mxu3 %v5758_v20  ;;  %v5774_v14 = vld [vmem:[%s7584_s3 + $0x770] sm:$0xff]  ;;  %v1349_v20 = vpack.c.bf16 %v1317_v8, %v1317_v8 }
 0x14c   :  { %v7425_v54 = vadd.f32 %v3506_v17, %v3494_v46 }
 0x14d   :  { %3720 = vmatpush.bf16.msra.mxu0 %v5733_v21  ;;  %3733 = vmatpush.bf16.msra.mxu1 %v5741_v23  ;;  %v5790_v21 = vld [vmem:[%s7584_s3 + $0x7f0] sm:$0xff]  ;;  %v5765_v23 = vld [vmem:[%s7584_s3 + $0x728] sm:$0xff] }
 0x14f   :  { %3746 = vmatpush.bf16.msra.mxu2 %v5749_v27  ;;  %3759 = vmatpush.bf16.msra.mxu3 %v5757_v29  ;;  %v5773_v27 = vld [vmem:[%s7584_s3 + $0x768] sm:$0xff] }
 0x150   :  { %v5781_v29 = vld [vmem:[%s7584_s3 + $0x7a8] sm:$0xff] }
 0x151   :  { %3721 = vmatpush.bf16.msra.mxu0 %v5732_v34  ;;  %3734 = vmatpush.bf16.msra.mxu1 %v5740_v35  ;;  %v3495_v59 = vpop.f32.mrf.mxu2  ;;  %v3508_v39 = vpop.f32.mrf.mxu3  ;;  %v5764_v35 = vld [vmem:[%s7584_s3 + $0x720] sm:$0xff] }
 0x152   :  { %v1261_v59 = vadd.f32 %v7219_v44, %v195_v50  ;;  %v5768_v44 = vld [vmem:[%s7584_s3 + $0x740] sm:$0xff] }
 0x153   :  { %3747 = vmatpush.bf16.msra.mxu2 %v5748_v36  ;;  %3760 = vmatpush.bf16.msra.mxu3 %v5756_v38  ;;  %v5772_v36 = vld [vmem:[%s7584_s3 + $0x760] sm:$0xff] }
 0x155   :  { %3722 = vmatpush.bf16.msra.mxu0 %v5731_v26  ;;  %3735 = vmatpush.bf16.msra.mxu1 %v5739_v40  ;;  %v5788_v26 = vld [vmem:[%s7584_s3 + $0x7e0] sm:$0xff]  ;;  %v5763_v40 = vld [vmem:[%s7584_s3 + $0x718] sm:$0xff] }
 0x157   :  { %3748 = vmatpush.bf16.msra.mxu2 %v5747_v41  ;;  %3761 = vmatpush.bf16.msra.mxu3 %v5755_v43  ;;  %v5771_v41 = vld [vmem:[%s7584_s3 + $0x758] sm:$0xff] }
 0x158   :  { %v5779_v43 = vld [vmem:[%s7584_s3 + $0x798] sm:$0xff] }
 0x159   :  { %3723 = vmatpush.bf16.msra.mxu0 %v5730_v47  ;;  %3736 = vmatpush.bf16.msra.mxu1 %v5738_v48  ;;  %v194_v48 = vperm.slane %v7420_v45, 4 }
 0x15b   :  { %3749 = vmatpush.bf16.msra.mxu2 %v5746_v57  ;;  %3762 = vmatpush.bf16.msra.mxu3 %v5754_v7  ;;  %v5778_v7 = vld [vmem:[%s7584_s3 + $0x790] sm:$0xff] }
 0x15d   :  { %3724 = vmatpush.bf16.msra.mxu0 %v5729_v52  ;;  %3737 = vmatpush.bf16.msra.mxu1 %v5737_v53  ;;  %v197_v52 = vperm.slane %v7420_v45, 7  ;;  %v5761_v53 = vld [vmem:[%s7584_s3 + $0x708] sm:$0xff]  ;;  %v1274_v45 = vadd.f32 %v7249_v49, %v196_v51  ;;  %v5776_v49 = vld [vmem:[%s7584_s3 + $0x780] sm:$0xff] }
 0x15f   :  { %3750 = vmatpush.bf16.msra.mxu2 %v5745_v55  ;;  %3763 = vmatpush.bf16.msra.mxu3 %v5753_v25  ;;  %v1248_v55 = vadd.f32 %v7213_v22, %v194_v48  ;;  %v5777_v25 = vld [vmem:[%s7584_s3 + $0x788] sm:$0xff]  ;;  %v1287_v61 = vadd.f32 %v7257_v56, %v197_v52  ;;  %v5784_v56 = vld [vmem:[%s7584_s3 + $0x7c0] sm:$0xff]  ;;  %v12_v52 = vstv %s7588_s6 }
 0x160   :  { %13 = vst [vmem:[#allocation2] sm:$0x1] %v12_v52 }
 0x161   :  { %3725 = vmatpush.bf16.msra.mxu0 %v5728_v62  ;;  %3738 = vmatpush.bf16.msra.mxu1 %v5736_v3  ;;  %v3519_v32 = vpop.f32.mrf.mxu0  ;;  %v3532_v34 = vpop.f32.mrf.mxu1  ;;  %v1318_v62 = vmax.f32 %v1248_v55, 0.0  ;;  %v1319_v3 = vmax.f32 %v1261_v59, 0.0  ;;  %v1321_v63 = vmax.f32 %v1287_v61, 0.0 }
 0x162   :  { %v3520_v33 = vadd.f32 %v3519_v32, %v7425_v54  ;;  %v5762_v54 = vld [vmem:[%s7584_s3 + $0x710] sm:$0xff] }
 0x163   :  { %3751 = vmatpush.bf16.msra.mxu2 %v5744_v6  ;;  %3764 = vmatpush.bf16.msra.mxu3 %v5752_v16  ;;  %v1320_v6 = vmax.f32 %v1274_v45, 0.0  ;;  %v1350_v16 = vpack.c.bf16 %v1318_v62, %v1318_v62  ;;  %v1353_v1 = vpack.c.bf16 %v1321_v63, %v1321_v63 }
 0x164   :  { %3726 = vmatmul.bf16.vlgmr.msra.gmra.mxu0 %v1346_v10  ;;  %3739 = vmatmul.bf16.vlgmr.msra.gmra.mxu1 %v1347_v12  ;;  %v3533_v38 = vadd.f32 %v3532_v34, %v3520_v33 }
 0x165   :  { %3770 = vmatpush.bf16.msrb.mxu0 %v5767_v18  ;;  %3783 = vmatpush.bf16.msrb.mxu1 %v5775_v2  ;;  %v1351_v18 = vpack.c.bf16 %v1319_v3, %v1319_v3  ;;  %v1352_v0 = vpack.c.bf16 %v1320_v6, %v1320_v6  ;;  %v5793_v6 = vld [vmem:[%s7587_s5] ss:$0 sm:$0xff] }
 0x166   :  { %3752 = vmatmul.bf16.vlgmr.msra.gmra.mxu2 %v1348_v13  ;;  %3765 = vmatmul.bf16.vlgmr.msra.gmra.mxu3 %v1349_v20 }
 0x167   :  { %3796 = vmatpush.bf16.msrb.mxu2 %v5783_v5  ;;  %3809 = vmatpush.bf16.msrb.mxu3 %v5791_v9 }
 0x169   :  { %3771 = vmatpush.bf16.msrb.mxu0 %v5766_v11  ;;  %3784 = vmatpush.bf16.msrb.mxu1 %v5774_v14  ;;  %v3545_v46 = vpop.f32.mrf.mxu2  ;;  %v3558_v24 = vpop.f32.mrf.mxu3 }
 0x16a   :  { %v3546_v17 = vadd.f32 %v3545_v46, %v3533_v38  ;;  %v3521_v28 = vpop.f32.mrf.mxu0  ;;  %v3534_v47 = vpop.f32.mrf.mxu1 }
 0x16b   :  { %3797 = vmatpush.bf16.msrb.mxu2 %v5782_v19  ;;  %3810 = vmatpush.bf16.msrb.mxu3 %v5790_v21 }
 0x16c   :  { %v3559_v57 = vadd.f32 %v3558_v24, %v3546_v17 }
 0x16d   :  { %3772 = vmatpush.bf16.msrb.mxu0 %v5765_v23  ;;  %3785 = vmatpush.bf16.msrb.mxu1 %v5773_v27 }
 0x16f   :  { %3798 = vmatpush.bf16.msrb.mxu2 %v5781_v29  ;;  %3811 = vmatpush.bf16.msrb.mxu3 %v5789_v31 }
 0x171   :  { %3773 = vmatpush.bf16.msrb.mxu0 %v5764_v35  ;;  %3786 = vmatpush.bf16.msrb.mxu1 %v5772_v36  ;;  %v3547_v22 = vpop.f32.mrf.mxu2  ;;  %v3560_v39 = vpop.f32.mrf.mxu3 }
 0x173   :  { %3799 = vmatpush.bf16.msrb.mxu2 %v5780_v37  ;;  %3812 = vmatpush.bf16.msrb.mxu3 %v5788_v26 }
 0x175   :  { %3774 = vmatpush.bf16.msrb.mxu0 %v5763_v40  ;;  %3787 = vmatpush.bf16.msrb.mxu1 %v5771_v41 }
 0x177   :  { %3800 = vmatpush.bf16.msrb.mxu2 %v5779_v43  ;;  %3813 = vmatpush.bf16.msrb.mxu3 %v5787_v15 }
 0x179   :  { %3775 = vmatpush.bf16.msrb.mxu0 %v5762_v54  ;;  %3788 = vmatpush.bf16.msrb.mxu1 %v5770_v4 }
 0x17b   :  { %3801 = vmatpush.bf16.msrb.mxu2 %v5778_v7  ;;  %3814 = vmatpush.bf16.msrb.mxu3 %v5786_v30 }
 0x17d   :  { %3776 = vmatpush.bf16.msrb.mxu0 %v5761_v53  ;;  %3789 = vmatpush.bf16.msrb.mxu1 %v5769_v58 }
 0x17f   :  { %3802 = vmatpush.bf16.msrb.mxu2 %v5777_v25  ;;  %3815 = vmatpush.bf16.msrb.mxu3 %v5785_v60 }
 0x181   :  { %3777 = vmatpush.bf16.msrb.mxu0 %v5760_v42  ;;  %3790 = vmatpush.bf16.msrb.mxu1 %v5768_v44  ;;  %v3571_v2 = vpop.f32.mrf.mxu0  ;;  %v3584_v8 = vpop.f32.mrf.mxu1 }
 0x182   :  { %v3572_v5 = vadd.f32 %v3571_v2, %v3559_v57 }
 0x183   :  { %3803 = vmatpush.bf16.msrb.mxu2 %v5776_v49  ;;  %3816 = vmatpush.bf16.msrb.mxu3 %v5784_v56 }
 0x184   :  { %3778 = vmatmul.bf16.vlgmr.msrb.gmra.mxu0 %v1350_v16  ;;  %3791 = vmatmul.bf16.vlgmr.msrb.gmra.mxu1 %v1351_v18  ;;  %v3585_v9 = vadd.f32 %v3584_v8, %v3572_v5 }
 0x186   :  { %3804 = vmatmul.bf16.vlgmr.msrb.gmra.mxu2 %v1352_v0  ;;  %3817 = vmatmul.bf16.vlgmr.msrb.gmra.mxu3 %v1353_v1  ;;  %v5794_v1 = vld [vmem:[#allocation2] ss:$0 sm:$0xff] }
 0x189   :  { %v3597_v10 = vpop.f32.mrf.mxu2  ;;  %v3610_v12 = vpop.f32.mrf.mxu3 }
 0x18a   :  { %v3598_v11 = vadd.f32 %v3597_v10, %v3585_v9  ;;  %v3573_v13 = vpop.f32.mrf.mxu0  ;;  %v3586_v14 = vpop.f32.mrf.mxu1 }
 0x18c   :  { %v3611_v19 = vadd.f32 %v3610_v12, %v3598_v11 }
 0x191   :  { %v3599_v20 = vpop.f32.mrf.mxu2  ;;  %v3612_v21 = vpop.f32.mrf.mxu3 }
 0x1a1   :  { %v3623_v23 = vpop.f32.mrf.mxu0  ;;  %v3636_v29 = vpop.f32.mrf.mxu1 }
 0x1a2   :  { %v3624_v27 = vadd.f32 %v3623_v23, %v3611_v19 }
 0x1a4   :  { %v3637_v31 = vadd.f32 %v3636_v29, %v3624_v27 }
 0x1a9   :  { %v3649_v32 = vpop.f32.mrf.mxu2  ;;  %v3662_v34 = vpop.f32.mrf.mxu3 }
 0x1aa   :  { %v3650_v33 = vadd.f32 %v3649_v32, %v3637_v31  ;;  %v3625_v35 = vpop.f32.mrf.mxu0  ;;  %v3638_v36 = vpop.f32.mrf.mxu1 }
 0x1ac   :  { %v3663_v37 = vadd.f32 %v3662_v34, %v3650_v33 }
 0x1b1   :  { %v3651_v38 = vpop.f32.mrf.mxu2  ;;  %v3664_v26 = vpop.f32.mrf.mxu3 }
 0x1c1   :  { %v3675_v40 = vpop.f32.mrf.mxu0  ;;  %v3688_v41 = vpop.f32.mrf.mxu1 }
 0x1c2   :  { %v3676_v48 = vadd.f32 %v3675_v40, %v3663_v37 }
 0x1c4   :  { %v3689_v51 = vadd.f32 %v3688_v41, %v3676_v48 }
 0x1c9   :  { %v3701_v43 = vpop.f32.mrf.mxu2  ;;  %v3714_v15 = vpop.f32.mrf.mxu3 }
 0x1ca   :  { %v3677_v46 = vpop.f32.mrf.mxu0  ;;  %v3690_v17 = vpop.f32.mrf.mxu1  ;;  %v3702_v30 = vadd.f32 %v3701_v43, %v3689_v51 }
 0x1cc   :  { %v3715_v58 = vadd.f32 %v3714_v15, %v3702_v30 }
 0x1d1   :  { %v3703_v24 = vpop.f32.mrf.mxu2  ;;  %v3716_v28 = vpop.f32.mrf.mxu3 }
 0x1e1   :  { %v3727_v47 = vpop.f32.mrf.mxu0  ;;  %v3740_v54 = vpop.f32.mrf.mxu1 }
 0x1e2   :  { %v3728_v25 = vadd.f32 %v3727_v47, %v3715_v58 }
 0x1e4   :  { %v3741_v59 = vadd.f32 %v3740_v54, %v3728_v25 }
 0x1e9   :  { %v3753_v57 = vpop.f32.mrf.mxu2  ;;  %v3766_v4 = vpop.f32.mrf.mxu3 }
 0x1ea   :  { %v3729_v7 = vpop.f32.mrf.mxu0  ;;  %v3742_v50 = vpop.f32.mrf.mxu1  ;;  %v3754_v45 = vadd.f32 %v3753_v57, %v3741_v59 }
 0x1ec   :  { %v3767_v60 = vadd.f32 %v3766_v4, %v3754_v45 }
 0x1f1   :  { %v3755_v53 = vpop.f32.mrf.mxu2  ;;  %v3768_v55 = vpop.f32.mrf.mxu3 }
 0x201   :  { %v3779_v22 = vpop.f32.mrf.mxu0  ;;  %v3792_v61 = vpop.f32.mrf.mxu1 }
 0x202   :  { %v3780_v39 = vadd.f32 %v3779_v22, %v3767_v60 }
 0x204   :  { %v3793_v42 = vadd.f32 %v3792_v61, %v3780_v39 }
 0x209   :  { %v3805_v62 = vpop.f32.mrf.mxu2  ;;  %v3818_v49 = vpop.f32.mrf.mxu3 }
 0x20a   :  { %v3806_v44 = vadd.f32 %v3805_v62, %v3793_v42  ;;  %v3781_v3 = vpop.f32.mrf.mxu0  ;;  %v3794_v56 = vpop.f32.mrf.mxu1 }
 0x20c   :  { %v3819_v63 = vadd.f32 %v3818_v49, %v3806_v44 }
 0x20e   :  { %v3826_v16 = vmul.f32 %v5793_v6, %v3819_v63 }
 0x210   :  { %3827 = vadd.xlane.f32.xlu0 %v3826_v16 }
 0x211   :  { %v3807_v18 = vpop.f32.mrf.mxu2  ;;  %v3820_v0 = vpop.f32.mrf.mxu3 }
 0x283   :  { %v3828_v2 = vpop.xlane.xlu0 %3827 }
 0x284   :  { %v3833_v5 = vadd.f32 %v5794_v1, %v3828_v2 }
 0x286   :  { %3835 = vst.msk [vmem:[%s7589_s7] sm:$0xff] %vm3834_vm1, %v3833_v5 }

</bundles_post_ra>
